<compile_context>
chip_gen: v7x
topology: tpu7x:2x2x1
jax: 0.10.0
libtpu: 0.0.40
codegen_flags: <defaults>
</compile_context>

<pallas_src>
import math

import numpy as np

import jax
import jax.numpy as jnp
from jax import lax
from jax.experimental import pallas as pl
from jax.experimental.pallas import tpu as pltpu

_SQRT_2_OVER_PI = math.sqrt(2.0 / math.pi)
_BN_EPS = 1e-5
_MATMUL_SHIFT_MAX_L = 128     # below this: hoisted banded-matmul shifts; >=: pltpu.roll


def _gelu(x):
    # exact tanh-approximation GELU from the PyTorch module
    return 0.5 * x * (1.0 + jnp.tanh(_SQRT_2_OVER_PI * (x + 0.044715 * x * x * x)))


# --------------------------------------------------------------------------------------
# Host-side constant operators (hoisted out of the kernel per the perf review)
# --------------------------------------------------------------------------------------
def _shift_matrix(L, off):
    """Banded 0/1 matrix S with (S @ y)[t] = y[t + off], zero outside [0, L)."""
    S = np.zeros((L, L), np.float32)
    for t in range(L):
        s = t + off
        if 0 <= s < L:
            S[t, s] = 1.0
    return S


def _pool_matrix(L):
    """Stride-2 row compaction P with (P @ y)[r] = y[2r]."""
    L2 = L // 2
    P = np.zeros((L2, L), np.float32)
    P[np.arange(L2), 2 * np.arange(L2)] = 1.0
    return P


def _pick_bb(B, max_bb=8):
    """Batch items per grid step; keep grid >= 2 steps (v7x has 2 TensorCores)."""
    best = 1
    for bb in range(1, min(B, max_bb) + 1):
        if B % bb == 0 and B // bb >= 2:
            best = bb
    return best


# --------------------------------------------------------------------------------------
# Kernel
# --------------------------------------------------------------------------------------
def _make_block_kernel(bb, G, K, L, C, left, residual, use_matrix_shifts, off_to_idx):
    L2 = L // 2

    def body(xg_ref, w1_ref, a1_ref, c1_ref, w2_ref, b2_ref, shifts_ref, pool_ref, o_ref):
        if not use_matrix_shifts:
            # hoisted row index, shared by every edge mask (built once per grid step)
            row = lax.broadcasted_iota(jnp.int32, (L, 1), 0)

        def shift_time(y, off):
            # z[t, c] = y[t + off, c], zero-padded outside [0, L)  ('same' conv padding)
            if off == 0:
                return y
            if use_matrix_shifts:
                i = off_to_idx[off]
                return jnp.dot(shifts_ref[i * L:(i + 1) * L, :], y,
                               preferred_element_type=jnp.float32)
            # large-L path: sublane rotate on the idle XLU slot + small edge mask
            z = pltpu.roll(y, (-off) % L, axis=0)
            keep = jnp.logical_and(row + off >= 0, row + off < L)
            return jnp.where(keep, z, 0.0)

        for b in range(bb):
            # conv1 (grouped: groups == C_out, G input channels per group),
            # reassociated as  sum_k shift_{k-left}( sum_j w1[j,k,:] * x_j )
            acc = jnp.zeros((L, C), jnp.float32)
            for k in range(K):
                mixed = jnp.zeros((L, C), jnp.float32)
                for j in range(G):
                    mixed = mixed + w1_ref[j * K + k:j * K + k + 1, :] * xg_ref[b, j, :, :]
                acc = acc + shift_time(mixed, k - left)

            # conv1 bias + eval-mode BatchNorm folded into one per-channel affine, GELU
            h = _gelu(acc * a1_ref[...] + c1_ref[...])

            # conv2 (depthwise, 'same')
            acc2 = jnp.zeros((L, C), jnp.float32)
            for k in range(K):
                acc2 = acc2 + shift_time(w2_ref[k:k + 1, :] * h, k - left)
            acc2 = acc2 + b2_ref[...]

            if residual:      # module applies it only when residual and not downsample
                acc2 = acc2 + xg_ref[b, 0, :, :]

            # MaxPool1d(2, 2): pairwise max with the next row, then ONE hoisted
            # stride-2 compaction matmul; final GELU.  One contiguous output slab.
            maxed = jnp.maximum(acc2, shift_time(acc2, 1))
            pooled = jnp.dot(pool_ref[...], maxed, preferred_element_type=jnp.float32)
            o_ref[b, :, :] = _gelu(pooled)

    if use_matrix_shifts:
        return body

    def kernel_no_shift_stack(xg_ref, w1_ref, a1_ref, c1_ref, w2_ref, b2_ref,
                              pool_ref, o_ref):
        body(xg_ref, w1_ref, a1_ref, c1_ref, w2_ref, b2_ref, None, pool_ref, o_ref)

    return kernel_no_shift_stack


# --------------------------------------------------------------------------------------
# Wrapper
# --------------------------------------------------------------------------------------
def decoder_block(x, params, kernel_size, *, bb=None):
    """Pallas forward of DecoderBlock.  x: (B, L, C_in) f32 -> (B, L//2, C_out) f32."""
    B, L, Cin = x.shape
    K = kernel_size
    downsample = bool(params["downsample"])
    residual = bool(params["residual"]) and not downsample
    Cout = Cin // 2 if downsample else Cin
    G = Cin // Cout                     # input channels per group (groups == Cout)
    left = (K - 1) // 2
    L2 = L // 2
    if bb is None:
        bb = _pick_bb(B)
    assert B % bb == 0

    # Grouped channel view: output channel c of conv1 reads input channels G*c + j.
    if G == 1:
        xg = x[:, None]                                                # (B, 1, L, C)
    else:
        xg = jnp.stack([x[..., j::G] for j in range(G)], axis=1)       # (B, G, L, C_out)

    # Kernel-friendly weight layouts:
    #   w1[j*K + k, c] == conv1.weight[c, j, k];   w2[k, c] == conv2.weight[c, 0, k]
    w1 = jnp.transpose(params["conv1_w"], (1, 2, 0)).reshape(G * K, Cout)
    w2 = jnp.transpose(params["conv2_w"][:, 0, :], (1, 0))
    # conv1 bias + eval-mode BatchNorm folded into a single per-channel affine.
    a1 = (params["bn_gamma"] / jnp.sqrt(params["bn_var"] + _BN_EPS)).reshape(1, Cout)
    c1 = ((params["conv1_b"] - params["bn_mean"]) * a1[0] + params["bn_beta"]).reshape(1, Cout)
    b2 = params["conv2_b"].reshape(1, Cout)

    use_matrix_shifts = L < _MATMUL_SHIFT_MAX_L
    offsets = sorted(({k - left for k in range(K)} | {1}) - {0})
    off_to_idx = {o: i for i, o in enumerate(offsets)}

    kernel = _make_block_kernel(bb, G, K, L, Cout, left, residual,
                                use_matrix_shifts, off_to_idx)

    inputs = [xg, w1, a1, c1, w2, b2]
    in_specs = [
        pl.BlockSpec((bb, G, L, Cout), lambda i: (i, 0, 0, 0)),
        pl.BlockSpec((G * K, Cout), lambda i: (0, 0)),
        pl.BlockSpec((1, Cout), lambda i: (0, 0)),
        pl.BlockSpec((1, Cout), lambda i: (0, 0)),
        pl.BlockSpec((K, Cout), lambda i: (0, 0)),
        pl.BlockSpec((1, Cout), lambda i: (0, 0)),
    ]
    if use_matrix_shifts:
        shifts = jnp.asarray(np.concatenate([_shift_matrix(L, o) for o in offsets], axis=0))
        inputs.append(shifts)
        in_specs.append(pl.BlockSpec((len(offsets) * L, L), lambda i: (0, 0)))
    inputs.append(jnp.asarray(_pool_matrix(L)))
    in_specs.append(pl.BlockSpec((L2, L), lambda i: (0, 0)))

    return pl.pallas_call(
        kernel,
        out_shape=jax.ShapeDtypeStruct((B, L2, Cout), jnp.float32),
        grid=(B // bb,),
        in_specs=in_specs,
        out_specs=pl.BlockSpec((bb, L2, Cout), lambda i: (i, 0, 0)),
        compiler_params=pltpu.CompilerParams(
            dimension_semantics=("parallel",),
            vmem_limit_bytes=32 * 1024 * 1024,
        ),
    )(*inputs)


# --------------------------------------------------------------------------------------
# Synthetic "torch-shaped" parameters
# --------------------------------------------------------------------------------------
def init_decoder_block_params(key, text_channels, kernel_size, downsample, residual):
    Cout = text_channels // 2 if downsample else text_channels
    G = text_channels // Cout
    ks = jax.random.split(key, 8)
    s = 1.0 / math.sqrt(G * kernel_size)
    return {
        "downsample": downsample,
        "residual": residual,
        "conv1_w": s * jax.random.normal(ks[0], (Cout, G, kernel_size), jnp.float32),
        "conv1_b": 0.05 * jax.random.normal(ks[1], (Cout,), jnp.float32),
        "conv2_w": s * jax.random.normal(ks[2], (Cout, 1, kernel_size), jnp.float32),
        "conv2_b": 0.05 * jax.random.normal(ks[3], (Cout,), jnp.float32),
        "bn_gamma": 1.0 + 0.1 * jax.random.normal(ks[4], (Cout,), jnp.float32),
        "bn_beta": 0.05 * jax.random.normal(ks[5], (Cout,), jnp.float32),
        "bn_mean": 0.05 * jax.random.normal(ks[6], (Cout,), jnp.float32),
        "bn_var": 1.0 + 0.1 * jnp.abs(jax.random.normal(ks[7], (Cout,), jnp.float32)),
    }


# --------------------------------------------------------------------------------------
# Pure-JAX reference (independent math, mirrors the PyTorch module in eval mode)
# --------------------------------------------------------------------------------------
def ref_decoder_block(x, params, K):
    B, L, Cin = x.shape
    downsample = bool(params["downsample"])
    Cout = Cin // 2 if downsample else Cin
    G = Cin // Cout
    left = (K - 1) // 2
    right = K - 1 - left

    out = jnp.zeros((B, L, Cout), jnp.float32)
    for j in range(G):
        xj = x[..., j::G]
        xjp = jnp.pad(xj, ((0, 0), (left, right), (0, 0)))
        for k in range(K):
            out = out + params["conv1_w"][:, j, k][None, None, :] * xjp[:, k:k + L, :]
    out = out + params["conv1_b"][None, None, :]
    out = ((out - params["bn_mean"]) / jnp.sqrt(params["bn_var"] + _BN_EPS)
           * params["bn_gamma"] + params["bn_beta"])
    out = _gelu(out)

    hp = jnp.pad(out, ((0, 0), (left, right), (0, 0)))
    out2 = jnp.zeros_like(out)
    for k in range(K):
        out2 = out2 + params["conv2_w"][:, 0, k][None, None, :] * hp[:, k:k + L, :]
    out2 = out2 + params["conv2_b"][None, None, :]

    if params["residual"] and not downsample:
        out2 = out2 + x

    L2 = L // 2
    pooled = jnp.max(out2[:, :2 * L2, :].reshape(B, L2, 2, Cout), axis=2)
    return _gelu(pooled)


# --------------------------------------------------------------------------------------
if __name__ == "__main__":
    B, L, C = 4, 16, 32
    K = 3                     # kernel_stride = 1 (padding='same' requires stride 1)

    key = jax.random.PRNGKey(0)
    kx, kb1, kb2 = jax.random.split(key, 3)
    x = jax.random.normal(kx, (B, L, C), jnp.float32)       # (batch, time, channels)

    # block 1: residual path (no downsample); block 2: downsample (channel halving)
    p1 = init_decoder_block_params(kb1, C, K, downsample=False, residual=True)
    p2 = init_decoder_block_params(kb2, C, K, downsample=True, residual=True)

    fwd = jax.jit(lambda a: decoder_block(decoder_block(a, p1, K), p2, K))
    out = jax.block_until_ready(fwd(x))

    ref = jax.block_until_ready(ref_decoder_block(ref_decoder_block(x, p1, K), p2, K))

    assert out.shape == (B, L // 4, C // 2), out.shape
    assert bool(jnp.all(jnp.isfinite(out)))
    max_diff = float(jnp.max(jnp.abs(out - ref)))
    assert max_diff < 1e-3, f"kernel vs reference mismatch: max|diff|={max_diff}"
    print("KERNEL_OK")
</pallas_src>

<mosaic_0001>
module attributes {stable_mosaic.version = 11 : i64} {
  func.func @body(%arg0: i32, %arg1: memref<2x1x16x32xf32, #tpu.memory_space<vmem>>, %arg2: memref<3x32xf32, #tpu.memory_space<vmem>>, %arg3: memref<1x32xf32, #tpu.memory_space<vmem>>, %arg4: memref<1x32xf32, #tpu.memory_space<vmem>>, %arg5: memref<3x32xf32, #tpu.memory_space<vmem>>, %arg6: memref<1x32xf32, #tpu.memory_space<vmem>>, %arg7: memref<32x16xf32, #tpu.memory_space<vmem>>, %arg8: memref<8x16xf32, #tpu.memory_space<vmem>>, %arg9: memref<2x8x32xf32, #tpu.memory_space<vmem>>) attributes {dimension_semantics = [#tpu.dimension_semantics<parallel>], iteration_bounds = array<i64: 2>, scalar_prefetch = 0 : i64, scratch_operands = 0 : i64, tpu.core_type = #tpu.core_type<tc>, window_params = [{transform_indices = @transform_0, window_bounds = array<i64: 2, 1, 16, 32>}, {pipeline_mode = #tpu.pipeline_mode<synchronous>, transform_indices = @transform_1, window_bounds = array<i64: 3, 32>}, {pipeline_mode = #tpu.pipeline_mode<synchronous>, transform_indices = @transform_2, window_bounds = array<i64: 1, 32>}, {pipeline_mode = #tpu.pipeline_mode<synchronous>, transform_indices = @transform_3, window_bounds = array<i64: 1, 32>}, {pipeline_mode = #tpu.pipeline_mode<synchronous>, transform_indices = @transform_4, window_bounds = array<i64: 3, 32>}, {pipeline_mode = #tpu.pipeline_mode<synchronous>, transform_indices = @transform_5, window_bounds = array<i64: 1, 32>}, {pipeline_mode = #tpu.pipeline_mode<synchronous>, transform_indices = @transform_6, window_bounds = array<i64: 32, 16>}, {pipeline_mode = #tpu.pipeline_mode<synchronous>, transform_indices = @transform_7, window_bounds = array<i64: 8, 16>}, {transform_indices = @transform_8, window_bounds = array<i64: 2, 8, 32>}]} {
    %cst = arith.constant 0.000000e+00 : f32
    %0 = vector.broadcast %cst : f32 to vector<16x32xf32>
    %cst_0 = arith.constant 0.000000e+00 : f32
    %1 = vector.broadcast %cst_0 : f32 to vector<16x32xf32>
    %c0 = arith.constant 0 : index
    %c0_1 = arith.constant 0 : index
    %2 = vector.load %arg2[%c0, %c0_1] : memref<3x32xf32, #tpu.memory_space<vmem>>, vector<1x32xf32>
    %c0_2 = arith.constant 0 : index
    %c0_3 = arith.constant 0 : index
    %c0_4 = arith.constant 0 : index
    %c0_5 = arith.constant 0 : index
    %3 = vector.load %arg1[%c0_2, %c0_3, %c0_4, %c0_5] : memref<2x1x16x32xf32, #tpu.memory_space<vmem>>, vector<1x1x16x32xf32>
    %4 = vector.shape_cast %3 : vector<1x1x16x32xf32> to vector<16x32xf32>
    %5 = vector.broadcast %2 : vector<1x32xf32> to vector<16x32xf32>
    %6 = arith.mulf %5, %4 : vector<16x32xf32>
    %7 = arith.addf %1, %6 : vector<16x32xf32>
    %c0_6 = arith.constant 0 : index
    %c0_7 = arith.constant 0 : index
    %8 = vector.load %arg7[%c0_6, %c0_7] : memref<32x16xf32, #tpu.memory_space<vmem>>, vector<16x16xf32>
    %cst_8 = arith.constant dense<0.000000e+00> : vector<16x32xf32>
    %9 = tpu.matmul %8, %7, %cst_8 {dimension_numbers = #tpu.dot_dimension_numbers<[1], [0], [0], [1], [0, 0, 1, 1], [], []>} : vector<16x16xf32>, vector<16x32xf32>, vector<16x32xf32> -> vector<16x32xf32>
    %10 = arith.addf %0, %9 : vector<16x32xf32>
    %cst_9 = arith.constant 0.000000e+00 : f32
    %11 = vector.broadcast %cst_9 : f32 to vector<16x32xf32>
    %c1 = arith.constant 1 : index
    %c0_10 = arith.constant 0 : index
    %12 = vector.load %arg2[%c1, %c0_10] : memref<3x32xf32, #tpu.memory_space<vmem>>, vector<1x32xf32>
    %c0_11 = arith.constant 0 : index
    %c0_12 = arith.constant 0 : index
    %c0_13 = arith.constant 0 : index
    %c0_14 = arith.constant 0 : index
    %13 = vector.load %arg1[%c0_11, %c0_12, %c0_13, %c0_14] : memref<2x1x16x32xf32, #tpu.memory_space<vmem>>, vector<1x1x16x32xf32>
    %14 = vector.shape_cast %13 : vector<1x1x16x32xf32> to vector<16x32xf32>
    %15 = vector.broadcast %12 : vector<1x32xf32> to vector<16x32xf32>
    %16 = arith.mulf %15, %14 : vector<16x32xf32>
    %17 = arith.addf %11, %16 : vector<16x32xf32>
    %18 = arith.addf %10, %17 : vector<16x32xf32>
    %cst_15 = arith.constant 0.000000e+00 : f32
    %19 = vector.broadcast %cst_15 : f32 to vector<16x32xf32>
    %c2 = arith.constant 2 : index
    %c0_16 = arith.constant 0 : index
    %20 = vector.load %arg2[%c2, %c0_16] : memref<3x32xf32, #tpu.memory_space<vmem>>, vector<1x32xf32>
    %c0_17 = arith.constant 0 : index
    %c0_18 = arith.constant 0 : index
    %c0_19 = arith.constant 0 : index
    %c0_20 = arith.constant 0 : index
    %21 = vector.load %arg1[%c0_17, %c0_18, %c0_19, %c0_20] : memref<2x1x16x32xf32, #tpu.memory_space<vmem>>, vector<1x1x16x32xf32>
    %22 = vector.shape_cast %21 : vector<1x1x16x32xf32> to vector<16x32xf32>
    %23 = vector.broadcast %20 : vector<1x32xf32> to vector<16x32xf32>
    %24 = arith.mulf %23, %22 : vector<16x32xf32>
    %25 = arith.addf %19, %24 : vector<16x32xf32>
    %c16 = arith.constant 16 : index
    %c0_21 = arith.constant 0 : index
    %26 = vector.load %arg7[%c16, %c0_21] : memref<32x16xf32, #tpu.memory_space<vmem>>, vector<16x16xf32>
    %cst_22 = arith.constant dense<0.000000e+00> : vector<16x32xf32>
    %27 = tpu.matmul %26, %25, %cst_22 {dimension_numbers = #tpu.dot_dimension_numbers<[1], [0], [0], [1], [0, 0, 1, 1], [], []>} : vector<16x16xf32>, vector<16x32xf32>, vector<16x32xf32> -> vector<16x32xf32>
    %28 = arith.addf %18, %27 : vector<16x32xf32>
    %c0_23 = arith.constant 0 : index
    %c0_24 = arith.constant 0 : index
    %29 = vector.load %arg3[%c0_23, %c0_24] : memref<1x32xf32, #tpu.memory_space<vmem>>, vector<1x32xf32>
    %30 = vector.broadcast %29 : vector<1x32xf32> to vector<16x32xf32>
    %31 = arith.mulf %28, %30 : vector<16x32xf32>
    %c0_25 = arith.constant 0 : index
    %c0_26 = arith.constant 0 : index
    %32 = vector.load %arg4[%c0_25, %c0_26] : memref<1x32xf32, #tpu.memory_space<vmem>>, vector<1x32xf32>
    %33 = vector.broadcast %32 : vector<1x32xf32> to vector<16x32xf32>
    %34 = arith.addf %31, %33 : vector<16x32xf32>
    %cst_27 = arith.constant 5.000000e-01 : f32
    %35 = vector.broadcast %cst_27 : f32 to vector<16x32xf32>
    %36 = arith.mulf %35, %34 : vector<16x32xf32>
    %cst_28 = arith.constant 4.471500e-02 : f32
    %37 = vector.broadcast %cst_28 : f32 to vector<16x32xf32>
    %38 = arith.mulf %37, %34 : vector<16x32xf32>
    %39 = arith.mulf %38, %34 : vector<16x32xf32>
    %40 = arith.mulf %39, %34 : vector<16x32xf32>
    %41 = arith.addf %34, %40 : vector<16x32xf32>
    %cst_29 = arith.constant 0.797884583 : f32
    %42 = vector.broadcast %cst_29 : f32 to vector<16x32xf32>
    %43 = arith.mulf %42, %41 : vector<16x32xf32>
    %44 = math.tanh %43 : vector<16x32xf32>
    %cst_30 = arith.constant 1.000000e+00 : f32
    %45 = vector.broadcast %cst_30 : f32 to vector<16x32xf32>
    %46 = arith.addf %45, %44 : vector<16x32xf32>
    %47 = arith.mulf %36, %46 : vector<16x32xf32>
    %cst_31 = arith.constant 0.000000e+00 : f32
    %48 = vector.broadcast %cst_31 : f32 to vector<16x32xf32>
    %c0_32 = arith.constant 0 : index
    %c0_33 = arith.constant 0 : index
    %49 = vector.load %arg5[%c0_32, %c0_33] : memref<3x32xf32, #tpu.memory_space<vmem>>, vector<1x32xf32>
    %50 = vector.broadcast %49 : vector<1x32xf32> to vector<16x32xf32>
    %51 = arith.mulf %50, %47 : vector<16x32xf32>
    %c0_34 = arith.constant 0 : index
    %c0_35 = arith.constant 0 : index
    %52 = vector.load %arg7[%c0_34, %c0_35] : memref<32x16xf32, #tpu.memory_space<vmem>>, vector<16x16xf32>
    %cst_36 = arith.constant dense<0.000000e+00> : vector<16x32xf32>
    %53 = tpu.matmul %52, %51, %cst_36 {dimension_numbers = #tpu.dot_dimension_numbers<[1], [0], [0], [1], [0, 0, 1, 1], [], []>} : vector<16x16xf32>, vector<16x32xf32>, vector<16x32xf32> -> vector<16x32xf32>
    %54 = arith.addf %48, %53 : vector<16x32xf32>
    %c1_37 = arith.constant 1 : index
    %c0_38 = arith.constant 0 : index
    %55 = vector.load %arg5[%c1_37, %c0_38] : memref<3x32xf32, #tpu.memory_space<vmem>>, vector<1x32xf32>
    %56 = vector.broadcast %55 : vector<1x32xf32> to vector<16x32xf32>
    %57 = arith.mulf %56, %47 : vector<16x32xf32>
    %58 = arith.addf %54, %57 : vector<16x32xf32>
    %c2_39 = arith.constant 2 : index
    %c0_40 = arith.constant 0 : index
    %59 = vector.load %arg5[%c2_39, %c0_40] : memref<3x32xf32, #tpu.memory_space<vmem>>, vector<1x32xf32>
    %60 = vector.broadcast %59 : vector<1x32xf32> to vector<16x32xf32>
    %61 = arith.mulf %60, %47 : vector<16x32xf32>
    %c16_41 = arith.constant 16 : index
    %c0_42 = arith.constant 0 : index
    %62 = vector.load %arg7[%c16_41, %c0_42] : memref<32x16xf32, #tpu.memory_space<vmem>>, vector<16x16xf32>
    %cst_43 = arith.constant dense<0.000000e+00> : vector<16x32xf32>
    %63 = tpu.matmul %62, %61, %cst_43 {dimension_numbers = #tpu.dot_dimension_numbers<[1], [0], [0], [1], [0, 0, 1, 1], [], []>} : vector<16x16xf32>, vector<16x32xf32>, vector<16x32xf32> -> vector<16x32xf32>
    %64 = arith.addf %58, %63 : vector<16x32xf32>
    %c0_44 = arith.constant 0 : index
    %c0_45 = arith.constant 0 : index
    %65 = vector.load %arg6[%c0_44, %c0_45] : memref<1x32xf32, #tpu.memory_space<vmem>>, vector<1x32xf32>
    %66 = vector.broadcast %65 : vector<1x32xf32> to vector<16x32xf32>
    %67 = arith.addf %64, %66 : vector<16x32xf32>
    %c0_46 = arith.constant 0 : index
    %c0_47 = arith.constant 0 : index
    %c0_48 = arith.constant 0 : index
    %c0_49 = arith.constant 0 : index
    %68 = vector.load %arg1[%c0_46, %c0_47, %c0_48, %c0_49] : memref<2x1x16x32xf32, #tpu.memory_space<vmem>>, vector<1x1x16x32xf32>
    %69 = vector.shape_cast %68 : vector<1x1x16x32xf32> to vector<16x32xf32>
    %70 = arith.addf %67, %69 : vector<16x32xf32>
    %c16_50 = arith.constant 16 : index
    %c0_51 = arith.constant 0 : index
    %71 = vector.load %arg7[%c16_50, %c0_51] : memref<32x16xf32, #tpu.memory_space<vmem>>, vector<16x16xf32>
    %cst_52 = arith.constant dense<0.000000e+00> : vector<16x32xf32>
    %72 = tpu.matmul %71, %70, %cst_52 {dimension_numbers = #tpu.dot_dimension_numbers<[1], [0], [0], [1], [0, 0, 1, 1], [], []>} : vector<16x16xf32>, vector<16x32xf32>, vector<16x32xf32> -> vector<16x32xf32>
    %73 = arith.maximumf %70, %72 : vector<16x32xf32>
    %c0_53 = arith.constant 0 : index
    %c0_54 = arith.constant 0 : index
    %74 = vector.load %arg8[%c0_53, %c0_54] : memref<8x16xf32, #tpu.memory_space<vmem>>, vector<8x16xf32>
    %cst_55 = arith.constant dense<0.000000e+00> : vector<8x32xf32>
    %75 = tpu.matmul %74, %73, %cst_55 {dimension_numbers = #tpu.dot_dimension_numbers<[1], [0], [0], [1], [0, 0, 1, 1], [], []>} : vector<8x16xf32>, vector<16x32xf32>, vector<8x32xf32> -> vector<8x32xf32>
    %cst_56 = arith.constant 5.000000e-01 : f32
    %76 = vector.broadcast %cst_56 : f32 to vector<8x32xf32>
    %77 = arith.mulf %76, %75 : vector<8x32xf32>
    %cst_57 = arith.constant 4.471500e-02 : f32
    %78 = vector.broadcast %cst_57 : f32 to vector<8x32xf32>
    %79 = arith.mulf %78, %75 : vector<8x32xf32>
    %80 = arith.mulf %79, %75 : vector<8x32xf32>
    %81 = arith.mulf %80, %75 : vector<8x32xf32>
    %82 = arith.addf %75, %81 : vector<8x32xf32>
    %cst_58 = arith.constant 0.797884583 : f32
    %83 = vector.broadcast %cst_58 : f32 to vector<8x32xf32>
    %84 = arith.mulf %83, %82 : vector<8x32xf32>
    %85 = math.tanh %84 : vector<8x32xf32>
    %cst_59 = arith.constant 1.000000e+00 : f32
    %86 = vector.broadcast %cst_59 : f32 to vector<8x32xf32>
    %87 = arith.addf %86, %85 : vector<8x32xf32>
    %88 = arith.mulf %77, %87 : vector<8x32xf32>
    %c0_60 = arith.constant 0 : index
    %c0_61 = arith.constant 0 : index
    %c0_62 = arith.constant 0 : index
    %89 = vector.load %arg9[%c0_60, %c0_61, %c0_62] : memref<2x8x32xf32, #tpu.memory_space<vmem>>, vector<1x8x32xf32>
    %90 = vector.shape_cast %89 : vector<1x8x32xf32> to vector<8x32xf32>
    %91 = vector.shape_cast %88 : vector<8x32xf32> to vector<1x8x32xf32>
    tpu.vector_store %arg9[%c0_60, %c0_61, %c0_62], %91 {strides = array<i32>} : memref<2x8x32xf32, #tpu.memory_space<vmem>>, vector<1x8x32xf32>,
    %cst_63 = arith.constant 0.000000e+00 : f32
    %92 = vector.broadcast %cst_63 : f32 to vector<16x32xf32>
    %cst_64 = arith.constant 0.000000e+00 : f32
    %93 = vector.broadcast %cst_64 : f32 to vector<16x32xf32>
    %c0_65 = arith.constant 0 : index
    %c0_66 = arith.constant 0 : index
    %94 = vector.load %arg2[%c0_65, %c0_66] : memref<3x32xf32, #tpu.memory_space<vmem>>, vector<1x32xf32>
    %c1_67 = arith.constant 1 : index
    %c0_68 = arith.constant 0 : index
    %c0_69 = arith.constant 0 : index
    %c0_70 = arith.constant 0 : index
    %95 = vector.load %arg1[%c1_67, %c0_68, %c0_69, %c0_70] : memref<2x1x16x32xf32, #tpu.memory_space<vmem>>, vector<1x1x16x32xf32>
    %96 = vector.shape_cast %95 : vector<1x1x16x32xf32> to vector<16x32xf32>
    %97 = vector.broadcast %94 : vector<1x32xf32> to vector<16x32xf32>
    %98 = arith.mulf %97, %96 : vector<16x32xf32>
    %99 = arith.addf %93, %98 : vector<16x32xf32>
    %c0_71 = arith.constant 0 : index
    %c0_72 = arith.constant 0 : index
    %100 = vector.load %arg7[%c0_71, %c0_72] : memref<32x16xf32, #tpu.memory_space<vmem>>, vector<16x16xf32>
    %cst_73 = arith.constant dense<0.000000e+00> : vector<16x32xf32>
    %101 = tpu.matmul %100, %99, %cst_73 {dimension_numbers = #tpu.dot_dimension_numbers<[1], [0], [0], [1], [0, 0, 1, 1], [], []>} : vector<16x16xf32>, vector<16x32xf32>, vector<16x32xf32> -> vector<16x32xf32>
    %102 = arith.addf %92, %101 : vector<16x32xf32>
    %cst_74 = arith.constant 0.000000e+00 : f32
    %103 = vector.broadcast %cst_74 : f32 to vector<16x32xf32>
    %c1_75 = arith.constant 1 : index
    %c0_76 = arith.constant 0 : index
    %104 = vector.load %arg2[%c1_75, %c0_76] : memref<3x32xf32, #tpu.memory_space<vmem>>, vector<1x32xf32>
    %c1_77 = arith.constant 1 : index
    %c0_78 = arith.constant 0 : index
    %c0_79 = arith.constant 0 : index
    %c0_80 = arith.constant 0 : index
    %105 = vector.load %arg1[%c1_77, %c0_78, %c0_79, %c0_80] : memref<2x1x16x32xf32, #tpu.memory_space<vmem>>, vector<1x1x16x32xf32>
    %106 = vector.shape_cast %105 : vector<1x1x16x32xf32> to vector<16x32xf32>
    %107 = vector.broadcast %104 : vector<1x32xf32> to vector<16x32xf32>
    %108 = arith.mulf %107, %106 : vector<16x32xf32>
    %109 = arith.addf %103, %108 : vector<16x32xf32>
    %110 = arith.addf %102, %109 : vector<16x32xf32>
    %cst_81 = arith.constant 0.000000e+00 : f32
    %111 = vector.broadcast %cst_81 : f32 to vector<16x32xf32>
    %c2_82 = arith.constant 2 : index
    %c0_83 = arith.constant 0 : index
    %112 = vector.load %arg2[%c2_82, %c0_83] : memref<3x32xf32, #tpu.memory_space<vmem>>, vector<1x32xf32>
    %c1_84 = arith.constant 1 : index
    %c0_85 = arith.constant 0 : index
    %c0_86 = arith.constant 0 : index
    %c0_87 = arith.constant 0 : index
    %113 = vector.load %arg1[%c1_84, %c0_85, %c0_86, %c0_87] : memref<2x1x16x32xf32, #tpu.memory_space<vmem>>, vector<1x1x16x32xf32>
    %114 = vector.shape_cast %113 : vector<1x1x16x32xf32> to vector<16x32xf32>
    %115 = vector.broadcast %112 : vector<1x32xf32> to vector<16x32xf32>
    %116 = arith.mulf %115, %114 : vector<16x32xf32>
    %117 = arith.addf %111, %116 : vector<16x32xf32>
    %c16_88 = arith.constant 16 : index
    %c0_89 = arith.constant 0 : index
    %118 = vector.load %arg7[%c16_88, %c0_89] : memref<32x16xf32, #tpu.memory_space<vmem>>, vector<16x16xf32>
    %cst_90 = arith.constant dense<0.000000e+00> : vector<16x32xf32>
    %119 = tpu.matmul %118, %117, %cst_90 {dimension_numbers = #tpu.dot_dimension_numbers<[1], [0], [0], [1], [0, 0, 1, 1], [], []>} : vector<16x16xf32>, vector<16x32xf32>, vector<16x32xf32> -> vector<16x32xf32>
    %120 = arith.addf %110, %119 : vector<16x32xf32>
    %c0_91 = arith.constant 0 : index
    %c0_92 = arith.constant 0 : index
    %121 = vector.load %arg3[%c0_91, %c0_92] : memref<1x32xf32, #tpu.memory_space<vmem>>, vector<1x32xf32>
    %122 = vector.broadcast %121 : vector<1x32xf32> to vector<16x32xf32>
    %123 = arith.mulf %120, %122 : vector<16x32xf32>
    %c0_93 = arith.constant 0 : index
    %c0_94 = arith.constant 0 : index
    %124 = vector.load %arg4[%c0_93, %c0_94] : memref<1x32xf32, #tpu.memory_space<vmem>>, vector<1x32xf32>
    %125 = vector.broadcast %124 : vector<1x32xf32> to vector<16x32xf32>
    %126 = arith.addf %123, %125 : vector<16x32xf32>
    %cst_95 = arith.constant 5.000000e-01 : f32
    %127 = vector.broadcast %cst_95 : f32 to vector<16x32xf32>
    %128 = arith.mulf %127, %126 : vector<16x32xf32>
    %cst_96 = arith.constant 4.471500e-02 : f32
    %129 = vector.broadcast %cst_96 : f32 to vector<16x32xf32>
    %130 = arith.mulf %129, %126 : vector<16x32xf32>
    %131 = arith.mulf %130, %126 : vector<16x32xf32>
    %132 = arith.mulf %131, %126 : vector<16x32xf32>
    %133 = arith.addf %126, %132 : vector<16x32xf32>
    %cst_97 = arith.constant 0.797884583 : f32
    %134 = vector.broadcast %cst_97 : f32 to vector<16x32xf32>
    %135 = arith.mulf %134, %133 : vector<16x32xf32>
    %136 = math.tanh %135 : vector<16x32xf32>
    %cst_98 = arith.constant 1.000000e+00 : f32
    %137 = vector.broadcast %cst_98 : f32 to vector<16x32xf32>
    %138 = arith.addf %137, %136 : vector<16x32xf32>
    %139 = arith.mulf %128, %138 : vector<16x32xf32>
    %cst_99 = arith.constant 0.000000e+00 : f32
    %140 = vector.broadcast %cst_99 : f32 to vector<16x32xf32>
    %c0_100 = arith.constant 0 : index
    %c0_101 = arith.constant 0 : index
    %141 = vector.load %arg5[%c0_100, %c0_101] : memref<3x32xf32, #tpu.memory_space<vmem>>, vector<1x32xf32>
    %142 = vector.broadcast %141 : vector<1x32xf32> to vector<16x32xf32>
    %143 = arith.mulf %142, %139 : vector<16x32xf32>
    %c0_102 = arith.constant 0 : index
    %c0_103 = arith.constant 0 : index
    %144 = vector.load %arg7[%c0_102, %c0_103] : memref<32x16xf32, #tpu.memory_space<vmem>>, vector<16x16xf32>
    %cst_104 = arith.constant dense<0.000000e+00> : vector<16x32xf32>
    %145 = tpu.matmul %144, %143, %cst_104 {dimension_numbers = #tpu.dot_dimension_numbers<[1], [0], [0], [1], [0, 0, 1, 1], [], []>} : vector<16x16xf32>, vector<16x32xf32>, vector<16x32xf32> -> vector<16x32xf32>
    %146 = arith.addf %140, %145 : vector<16x32xf32>
    %c1_105 = arith.constant 1 : index
    %c0_106 = arith.constant 0 : index
    %147 = vector.load %arg5[%c1_105, %c0_106] : memref<3x32xf32, #tpu.memory_space<vmem>>, vector<1x32xf32>
    %148 = vector.broadcast %147 : vector<1x32xf32> to vector<16x32xf32>
    %149 = arith.mulf %148, %139 : vector<16x32xf32>
    %150 = arith.addf %146, %149 : vector<16x32xf32>
    %c2_107 = arith.constant 2 : index
    %c0_108 = arith.constant 0 : index
    %151 = vector.load %arg5[%c2_107, %c0_108] : memref<3x32xf32, #tpu.memory_space<vmem>>, vector<1x32xf32>
    %152 = vector.broadcast %151 : vector<1x32xf32> to vector<16x32xf32>
    %153 = arith.mulf %152, %139 : vector<16x32xf32>
    %c16_109 = arith.constant 16 : index
    %c0_110 = arith.constant 0 : index
    %154 = vector.load %arg7[%c16_109, %c0_110] : memref<32x16xf32, #tpu.memory_space<vmem>>, vector<16x16xf32>
    %cst_111 = arith.constant dense<0.000000e+00> : vector<16x32xf32>
    %155 = tpu.matmul %154, %153, %cst_111 {dimension_numbers = #tpu.dot_dimension_numbers<[1], [0], [0], [1], [0, 0, 1, 1], [], []>} : vector<16x16xf32>, vector<16x32xf32>, vector<16x32xf32> -> vector<16x32xf32>
    %156 = arith.addf %150, %155 : vector<16x32xf32>
    %c0_112 = arith.constant 0 : index
    %c0_113 = arith.constant 0 : index
    %157 = vector.load %arg6[%c0_112, %c0_113] : memref<1x32xf32, #tpu.memory_space<vmem>>, vector<1x32xf32>
    %158 = vector.broadcast %157 : vector<1x32xf32> to vector<16x32xf32>
    %159 = arith.addf %156, %158 : vector<16x32xf32>
    %c1_114 = arith.constant 1 : index
    %c0_115 = arith.constant 0 : index
    %c0_116 = arith.constant 0 : index
    %c0_117 = arith.constant 0 : index
    %160 = vector.load %arg1[%c1_114, %c0_115, %c0_116, %c0_117] : memref<2x1x16x32xf32, #tpu.memory_space<vmem>>, vector<1x1x16x32xf32>
    %161 = vector.shape_cast %160 : vector<1x1x16x32xf32> to vector<16x32xf32>
    %162 = arith.addf %159, %161 : vector<16x32xf32>
    %c16_118 = arith.constant 16 : index
    %c0_119 = arith.constant 0 : index
    %163 = vector.load %arg7[%c16_118, %c0_119] : memref<32x16xf32, #tpu.memory_space<vmem>>, vector<16x16xf32>
    %cst_120 = arith.constant dense<0.000000e+00> : vector<16x32xf32>
    %164 = tpu.matmul %163, %162, %cst_120 {dimension_numbers = #tpu.dot_dimension_numbers<[1], [0], [0], [1], [0, 0, 1, 1], [], []>} : vector<16x16xf32>, vector<16x32xf32>, vector<16x32xf32> -> vector<16x32xf32>
    %165 = arith.maximumf %162, %164 : vector<16x32xf32>
    %c0_121 = arith.constant 0 : index
    %c0_122 = arith.constant 0 : index
    %166 = vector.load %arg8[%c0_121, %c0_122] : memref<8x16xf32, #tpu.memory_space<vmem>>, vector<8x16xf32>
    %cst_123 = arith.constant dense<0.000000e+00> : vector<8x32xf32>
    %167 = tpu.matmul %166, %165, %cst_123 {dimension_numbers = #tpu.dot_dimension_numbers<[1], [0], [0], [1], [0, 0, 1, 1], [], []>} : vector<8x16xf32>, vector<16x32xf32>, vector<8x32xf32> -> vector<8x32xf32>
    %cst_124 = arith.constant 5.000000e-01 : f32
    %168 = vector.broadcast %cst_124 : f32 to vector<8x32xf32>
    %169 = arith.mulf %168, %167 : vector<8x32xf32>
    %cst_125 = arith.constant 4.471500e-02 : f32
    %170 = vector.broadcast %cst_125 : f32 to vector<8x32xf32>
    %171 = arith.mulf %170, %167 : vector<8x32xf32>
    %172 = arith.mulf %171, %167 : vector<8x32xf32>
    %173 = arith.mulf %172, %167 : vector<8x32xf32>
    %174 = arith.addf %167, %173 : vector<8x32xf32>
    %cst_126 = arith.constant 0.797884583 : f32
    %175 = vector.broadcast %cst_126 : f32 to vector<8x32xf32>
    %176 = arith.mulf %175, %174 : vector<8x32xf32>
    %177 = math.tanh %176 : vector<8x32xf32>
    %cst_127 = arith.constant 1.000000e+00 : f32
    %178 = vector.broadcast %cst_127 : f32 to vector<8x32xf32>
    %179 = arith.addf %178, %177 : vector<8x32xf32>
    %180 = arith.mulf %169, %179 : vector<8x32xf32>
    %c1_128 = arith.constant 1 : index
    %c0_129 = arith.constant 0 : index
    %c0_130 = arith.constant 0 : index
    %181 = vector.load %arg9[%c1_128, %c0_129, %c0_130] : memref<2x8x32xf32, #tpu.memory_space<vmem>>, vector<1x8x32xf32>
    %182 = vector.shape_cast %181 : vector<1x8x32xf32> to vector<8x32xf32>
    %183 = vector.shape_cast %180 : vector<8x32xf32> to vector<1x8x32xf32>
    tpu.vector_store %arg9[%c1_128, %c0_129, %c0_130], %183 {strides = array<i32>} : memref<2x8x32xf32, #tpu.memory_space<vmem>>, vector<1x8x32xf32>,
    return
  }
  func.func @transform_0(%arg0: i32) -> (i32, i32, i32, i32) {
    %c0_i32 = arith.constant 0 : i32
    %c0_i32_0 = arith.constant 0 : i32
    %c0_i32_1 = arith.constant 0 : i32
    %c0_i32_2 = arith.constant 0 : i32
    return %arg0, %c0_i32, %c0_i32_0, %c0_i32_1 : i32, i32, i32, i32
  }
  func.func @transform_1(%arg0: i32) -> (i32, i32) {
    %c0_i32 = arith.constant 0 : i32
    %c0_i32_0 = arith.constant 0 : i32
    %c0_i32_1 = arith.constant 0 : i32
    return %c0_i32, %c0_i32_0 : i32, i32
  }
  func.func @transform_2(%arg0: i32) -> (i32, i32) {
    %c0_i32 = arith.constant 0 : i32
    %c0_i32_0 = arith.constant 0 : i32
    %c0_i32_1 = arith.constant 0 : i32
    return %c0_i32, %c0_i32_0 : i32, i32
  }
  func.func @transform_3(%arg0: i32) -> (i32, i32) {
    %c0_i32 = arith.constant 0 : i32
    %c0_i32_0 = arith.constant 0 : i32
    %c0_i32_1 = arith.constant 0 : i32
    return %c0_i32, %c0_i32_0 : i32, i32
  }
  func.func @transform_4(%arg0: i32) -> (i32, i32) {
    %c0_i32 = arith.constant 0 : i32
    %c0_i32_0 = arith.constant 0 : i32
    %c0_i32_1 = arith.constant 0 : i32
    return %c0_i32, %c0_i32_0 : i32, i32
  }
  func.func @transform_5(%arg0: i32) -> (i32, i32) {
    %c0_i32 = arith.constant 0 : i32
    %c0_i32_0 = arith.constant 0 : i32
    %c0_i32_1 = arith.constant 0 : i32
    return %c0_i32, %c0_i32_0 : i32, i32
  }
  func.func @transform_6(%arg0: i32) -> (i32, i32) {
    %c0_i32 = arith.constant 0 : i32
    %c0_i32_0 = arith.constant 0 : i32
    %c0_i32_1 = arith.constant 0 : i32
    return %c0_i32, %c0_i32_0 : i32, i32
  }
  func.func @transform_7(%arg0: i32) -> (i32, i32) {
    %c0_i32 = arith.constant 0 : i32
    %c0_i32_0 = arith.constant 0 : i32
    %c0_i32_1 = arith.constant 0 : i32
    return %c0_i32, %c0_i32_0 : i32, i32
  }
  func.func @transform_8(%arg0: i32) -> (i32, i32, i32) {
    %c0_i32 = arith.constant 0 : i32
    %c0_i32_0 = arith.constant 0 : i32
    %c0_i32_1 = arith.constant 0 : i32
    return %arg0, %c0_i32, %c0_i32_0 : i32, i32, i32
  }
}

module attributes {stable_mosaic.version = 11 : i64} {
  func.func @body(%arg0: i32, %arg1: memref<2x2x8x16xf32, #tpu.memory_space<vmem>>, %arg2: memref<6x16xf32, #tpu.memory_space<vmem>>, %arg3: memref<1x16xf32, #tpu.memory_space<vmem>>, %arg4: memref<1x16xf32, #tpu.memory_space<vmem>>, %arg5: memref<3x16xf32, #tpu.memory_space<vmem>>, %arg6: memref<1x16xf32, #tpu.memory_space<vmem>>, %arg7: memref<16x8xf32, #tpu.memory_space<vmem>>, %arg8: memref<4x8xf32, #tpu.memory_space<vmem>>, %arg9: memref<2x4x16xf32, #tpu.memory_space<vmem>>) attributes {dimension_semantics = [#tpu.dimension_semantics<parallel>], iteration_bounds = array<i64: 2>, scalar_prefetch = 0 : i64, scratch_operands = 0 : i64, tpu.core_type = #tpu.core_type<tc>, window_params = [{transform_indices = @transform_0, window_bounds = array<i64: 2, 2, 8, 16>}, {pipeline_mode = #tpu.pipeline_mode<synchronous>, transform_indices = @transform_1, window_bounds = array<i64: 6, 16>}, {pipeline_mode = #tpu.pipeline_mode<synchronous>, transform_indices = @transform_2, window_bounds = array<i64: 1, 16>}, {pipeline_mode = #tpu.pipeline_mode<synchronous>, transform_indices = @transform_3, window_bounds = array<i64: 1, 16>}, {pipeline_mode = #tpu.pipeline_mode<synchronous>, transform_indices = @transform_4, window_bounds = array<i64: 3, 16>}, {pipeline_mode = #tpu.pipeline_mode<synchronous>, transform_indices = @transform_5, window_bounds = array<i64: 1, 16>}, {pipeline_mode = #tpu.pipeline_mode<synchronous>, transform_indices = @transform_6, window_bounds = array<i64: 16, 8>}, {pipeline_mode = #tpu.pipeline_mode<synchronous>, transform_indices = @transform_7, window_bounds = array<i64: 4, 8>}, {transform_indices = @transform_8, window_bounds = array<i64: 2, 4, 16>}]} {
    %cst = arith.constant 0.000000e+00 : f32
    %0 = vector.broadcast %cst : f32 to vector<8x16xf32>
    %cst_0 = arith.constant 0.000000e+00 : f32
    %1 = vector.broadcast %cst_0 : f32 to vector<8x16xf32>
    %c0 = arith.constant 0 : index
    %c0_1 = arith.constant 0 : index
    %2 = vector.load %arg2[%c0, %c0_1] : memref<6x16xf32, #tpu.memory_space<vmem>>, vector<1x16xf32>
    %c0_2 = arith.constant 0 : index
    %c0_3 = arith.constant 0 : index
    %c0_4 = arith.constant 0 : index
    %c0_5 = arith.constant 0 : index
    %3 = vector.load %arg1[%c0_2, %c0_3, %c0_4, %c0_5] : memref<2x2x8x16xf32, #tpu.memory_space<vmem>>, vector<1x1x8x16xf32>
    %4 = vector.shape_cast %3 : vector<1x1x8x16xf32> to vector<8x16xf32>
    %5 = vector.broadcast %2 : vector<1x16xf32> to vector<8x16xf32>
    %6 = arith.mulf %5, %4 : vector<8x16xf32>
    %7 = arith.addf %1, %6 : vector<8x16xf32>
    %c3 = arith.constant 3 : index
    %c0_6 = arith.constant 0 : index
    %8 = vector.load %arg2[%c3, %c0_6] : memref<6x16xf32, #tpu.memory_space<vmem>>, vector<1x16xf32>
    %c0_7 = arith.constant 0 : index
    %c1 = arith.constant 1 : index
    %c0_8 = arith.constant 0 : index
    %c0_9 = arith.constant 0 : index
    %9 = vector.load %arg1[%c0_7, %c1, %c0_8, %c0_9] : memref<2x2x8x16xf32, #tpu.memory_space<vmem>>, vector<1x1x8x16xf32>
    %10 = vector.shape_cast %9 : vector<1x1x8x16xf32> to vector<8x16xf32>
    %11 = vector.broadcast %8 : vector<1x16xf32> to vector<8x16xf32>
    %12 = arith.mulf %11, %10 : vector<8x16xf32>
    %13 = arith.addf %7, %12 : vector<8x16xf32>
    %c0_10 = arith.constant 0 : index
    %c0_11 = arith.constant 0 : index
    %14 = vector.load %arg7[%c0_10, %c0_11] : memref<16x8xf32, #tpu.memory_space<vmem>>, vector<8x8xf32>
    %cst_12 = arith.constant dense<0.000000e+00> : vector<8x16xf32>
    %15 = tpu.matmul %14, %13, %cst_12 {dimension_numbers = #tpu.dot_dimension_numbers<[1], [0], [0], [1], [0, 0, 1, 1], [], []>} : vector<8x8xf32>, vector<8x16xf32>, vector<8x16xf32> -> vector<8x16xf32>
    %16 = arith.addf %0, %15 : vector<8x16xf32>
    %cst_13 = arith.constant 0.000000e+00 : f32
    %17 = vector.broadcast %cst_13 : f32 to vector<8x16xf32>
    %c1_14 = arith.constant 1 : index
    %c0_15 = arith.constant 0 : index
    %18 = vector.load %arg2[%c1_14, %c0_15] : memref<6x16xf32, #tpu.memory_space<vmem>>, vector<1x16xf32>
    %c0_16 = arith.constant 0 : index
    %c0_17 = arith.constant 0 : index
    %c0_18 = arith.constant 0 : index
    %c0_19 = arith.constant 0 : index
    %19 = vector.load %arg1[%c0_16, %c0_17, %c0_18, %c0_19] : memref<2x2x8x16xf32, #tpu.memory_space<vmem>>, vector<1x1x8x16xf32>
    %20 = vector.shape_cast %19 : vector<1x1x8x16xf32> to vector<8x16xf32>
    %21 = vector.broadcast %18 : vector<1x16xf32> to vector<8x16xf32>
    %22 = arith.mulf %21, %20 : vector<8x16xf32>
    %23 = arith.addf %17, %22 : vector<8x16xf32>
    %c4 = arith.constant 4 : index
    %c0_20 = arith.constant 0 : index
    %24 = vector.load %arg2[%c4, %c0_20] : memref<6x16xf32, #tpu.memory_space<vmem>>, vector<1x16xf32>
    %c0_21 = arith.constant 0 : index
    %c1_22 = arith.constant 1 : index
    %c0_23 = arith.constant 0 : index
    %c0_24 = arith.constant 0 : index
    %25 = vector.load %arg1[%c0_21, %c1_22, %c0_23, %c0_24] : memref<2x2x8x16xf32, #tpu.memory_space<vmem>>, vector<1x1x8x16xf32>
    %26 = vector.shape_cast %25 : vector<1x1x8x16xf32> to vector<8x16xf32>
    %27 = vector.broadcast %24 : vector<1x16xf32> to vector<8x16xf32>
    %28 = arith.mulf %27, %26 : vector<8x16xf32>
    %29 = arith.addf %23, %28 : vector<8x16xf32>
    %30 = arith.addf %16, %29 : vector<8x16xf32>
    %cst_25 = arith.constant 0.000000e+00 : f32
    %31 = vector.broadcast %cst_25 : f32 to vector<8x16xf32>
    %c2 = arith.constant 2 : index
    %c0_26 = arith.constant 0 : index
    %32 = vector.load %arg2[%c2, %c0_26] : memref<6x16xf32, #tpu.memory_space<vmem>>, vector<1x16xf32>
    %c0_27 = arith.constant 0 : index
    %c0_28 = arith.constant 0 : index
    %c0_29 = arith.constant 0 : index
    %c0_30 = arith.constant 0 : index
    %33 = vector.load %arg1[%c0_27, %c0_28, %c0_29, %c0_30] : memref<2x2x8x16xf32, #tpu.memory_space<vmem>>, vector<1x1x8x16xf32>
    %34 = vector.shape_cast %33 : vector<1x1x8x16xf32> to vector<8x16xf32>
    %35 = vector.broadcast %32 : vector<1x16xf32> to vector<8x16xf32>
    %36 = arith.mulf %35, %34 : vector<8x16xf32>
    %37 = arith.addf %31, %36 : vector<8x16xf32>
    %c5 = arith.constant 5 : index
    %c0_31 = arith.constant 0 : index
    %38 = vector.load %arg2[%c5, %c0_31] : memref<6x16xf32, #tpu.memory_space<vmem>>, vector<1x16xf32>
    %c0_32 = arith.constant 0 : index
    %c1_33 = arith.constant 1 : index
    %c0_34 = arith.constant 0 : index
    %c0_35 = arith.constant 0 : index
    %39 = vector.load %arg1[%c0_32, %c1_33, %c0_34, %c0_35] : memref<2x2x8x16xf32, #tpu.memory_space<vmem>>, vector<1x1x8x16xf32>
    %40 = vector.shape_cast %39 : vector<1x1x8x16xf32> to vector<8x16xf32>
    %41 = vector.broadcast %38 : vector<1x16xf32> to vector<8x16xf32>
    %42 = arith.mulf %41, %40 : vector<8x16xf32>
    %43 = arith.addf %37, %42 : vector<8x16xf32>
    %c8 = arith.constant 8 : index
    %c0_36 = arith.constant 0 : index
    %44 = vector.load %arg7[%c8, %c0_36] : memref<16x8xf32, #tpu.memory_space<vmem>>, vector<8x8xf32>
    %cst_37 = arith.constant dense<0.000000e+00> : vector<8x16xf32>
    %45 = tpu.matmul %44, %43, %cst_37 {dimension_numbers = #tpu.dot_dimension_numbers<[1], [0], [0], [1], [0, 0, 1, 1], [], []>} : vector<8x8xf32>, vector<8x16xf32>, vector<8x16xf32> -> vector<8x16xf32>
    %46 = arith.addf %30, %45 : vector<8x16xf32>
    %c0_38 = arith.constant 0 : index
    %c0_39 = arith.constant 0 : index
    %47 = vector.load %arg3[%c0_38, %c0_39] : memref<1x16xf32, #tpu.memory_space<vmem>>, vector<1x16xf32>
    %48 = vector.broadcast %47 : vector<1x16xf32> to vector<8x16xf32>
    %49 = arith.mulf %46, %48 : vector<8x16xf32>
    %c0_40 = arith.constant 0 : index
    %c0_41 = arith.constant 0 : index
    %50 = vector.load %arg4[%c0_40, %c0_41] : memref<1x16xf32, #tpu.memory_space<vmem>>, vector<1x16xf32>
    %51 = vector.broadcast %50 : vector<1x16xf32> to vector<8x16xf32>
    %52 = arith.addf %49, %51 : vector<8x16xf32>
    %cst_42 = arith.constant 5.000000e-01 : f32
    %53 = vector.broadcast %cst_42 : f32 to vector<8x16xf32>
    %54 = arith.mulf %53, %52 : vector<8x16xf32>
    %cst_43 = arith.constant 4.471500e-02 : f32
    %55 = vector.broadcast %cst_43 : f32 to vector<8x16xf32>
    %56 = arith.mulf %55, %52 : vector<8x16xf32>
    %57 = arith.mulf %56, %52 : vector<8x16xf32>
    %58 = arith.mulf %57, %52 : vector<8x16xf32>
    %59 = arith.addf %52, %58 : vector<8x16xf32>
    %cst_44 = arith.constant 0.797884583 : f32
    %60 = vector.broadcast %cst_44 : f32 to vector<8x16xf32>
    %61 = arith.mulf %60, %59 : vector<8x16xf32>
    %62 = math.tanh %61 : vector<8x16xf32>
    %cst_45 = arith.constant 1.000000e+00 : f32
    %63 = vector.broadcast %cst_45 : f32 to vector<8x16xf32>
    %64 = arith.addf %63, %62 : vector<8x16xf32>
    %65 = arith.mulf %54, %64 : vector<8x16xf32>
    %cst_46 = arith.constant 0.000000e+00 : f32
    %66 = vector.broadcast %cst_46 : f32 to vector<8x16xf32>
    %c0_47 = arith.constant 0 : index
    %c0_48 = arith.constant 0 : index
    %67 = vector.load %arg5[%c0_47, %c0_48] : memref<3x16xf32, #tpu.memory_space<vmem>>, vector<1x16xf32>
    %68 = vector.broadcast %67 : vector<1x16xf32> to vector<8x16xf32>
    %69 = arith.mulf %68, %65 : vector<8x16xf32>
    %c0_49 = arith.constant 0 : index
    %c0_50 = arith.constant 0 : index
    %70 = vector.load %arg7[%c0_49, %c0_50] : memref<16x8xf32, #tpu.memory_space<vmem>>, vector<8x8xf32>
    %cst_51 = arith.constant dense<0.000000e+00> : vector<8x16xf32>
    %71 = tpu.matmul %70, %69, %cst_51 {dimension_numbers = #tpu.dot_dimension_numbers<[1], [0], [0], [1], [0, 0, 1, 1], [], []>} : vector<8x8xf32>, vector<8x16xf32>, vector<8x16xf32> -> vector<8x16xf32>
    %72 = arith.addf %66, %71 : vector<8x16xf32>
    %c1_52 = arith.constant 1 : index
    %c0_53 = arith.constant 0 : index
    %73 = vector.load %arg5[%c1_52, %c0_53] : memref<3x16xf32, #tpu.memory_space<vmem>>, vector<1x16xf32>
    %74 = vector.broadcast %73 : vector<1x16xf32> to vector<8x16xf32>
    %75 = arith.mulf %74, %65 : vector<8x16xf32>
    %76 = arith.addf %72, %75 : vector<8x16xf32>
    %c2_54 = arith.constant 2 : index
    %c0_55 = arith.constant 0 : index
    %77 = vector.load %arg5[%c2_54, %c0_55] : memref<3x16xf32, #tpu.memory_space<vmem>>, vector<1x16xf32>
    %78 = vector.broadcast %77 : vector<1x16xf32> to vector<8x16xf32>
    %79 = arith.mulf %78, %65 : vector<8x16xf32>
    %c8_56 = arith.constant 8 : index
    %c0_57 = arith.constant 0 : index
    %80 = vector.load %arg7[%c8_56, %c0_57] : memref<16x8xf32, #tpu.memory_space<vmem>>, vector<8x8xf32>
    %cst_58 = arith.constant dense<0.000000e+00> : vector<8x16xf32>
    %81 = tpu.matmul %80, %79, %cst_58 {dimension_numbers = #tpu.dot_dimension_numbers<[1], [0], [0], [1], [0, 0, 1, 1], [], []>} : vector<8x8xf32>, vector<8x16xf32>, vector<8x16xf32> -> vector<8x16xf32>
    %82 = arith.addf %76, %81 : vector<8x16xf32>
    %c0_59 = arith.constant 0 : index
    %c0_60 = arith.constant 0 : index
    %83 = vector.load %arg6[%c0_59, %c0_60] : memref<1x16xf32, #tpu.memory_space<vmem>>, vector<1x16xf32>
    %84 = vector.broadcast %83 : vector<1x16xf32> to vector<8x16xf32>
    %85 = arith.addf %82, %84 : vector<8x16xf32>
    %c8_61 = arith.constant 8 : index
    %c0_62 = arith.constant 0 : index
    %86 = vector.load %arg7[%c8_61, %c0_62] : memref<16x8xf32, #tpu.memory_space<vmem>>, vector<8x8xf32>
    %cst_63 = arith.constant dense<0.000000e+00> : vector<8x16xf32>
    %87 = tpu.matmul %86, %85, %cst_63 {dimension_numbers = #tpu.dot_dimension_numbers<[1], [0], [0], [1], [0, 0, 1, 1], [], []>} : vector<8x8xf32>, vector<8x16xf32>, vector<8x16xf32> -> vector<8x16xf32>
    %88 = arith.maximumf %85, %87 : vector<8x16xf32>
    %c0_64 = arith.constant 0 : index
    %c0_65 = arith.constant 0 : index
    %89 = vector.load %arg8[%c0_64, %c0_65] : memref<4x8xf32, #tpu.memory_space<vmem>>, vector<4x8xf32>
    %cst_66 = arith.constant dense<0.000000e+00> : vector<4x16xf32>
    %90 = tpu.matmul %89, %88, %cst_66 {dimension_numbers = #tpu.dot_dimension_numbers<[1], [0], [0], [1], [0, 0, 1, 1], [], []>} : vector<4x8xf32>, vector<8x16xf32>, vector<4x16xf32> -> vector<4x16xf32>
    %cst_67 = arith.constant 5.000000e-01 : f32
    %91 = vector.broadcast %cst_67 : f32 to vector<4x16xf32>
    %92 = arith.mulf %91, %90 : vector<4x16xf32>
    %cst_68 = arith.constant 4.471500e-02 : f32
    %93 = vector.broadcast %cst_68 : f32 to vector<4x16xf32>
    %94 = arith.mulf %93, %90 : vector<4x16xf32>
    %95 = arith.mulf %94, %90 : vector<4x16xf32>
    %96 = arith.mulf %95, %90 : vector<4x16xf32>
    %97 = arith.addf %90, %96 : vector<4x16xf32>
    %cst_69 = arith.constant 0.797884583 : f32
    %98 = vector.broadcast %cst_69 : f32 to vector<4x16xf32>
    %99 = arith.mulf %98, %97 : vector<4x16xf32>
    %100 = math.tanh %99 : vector<4x16xf32>
    %cst_70 = arith.constant 1.000000e+00 : f32
    %101 = vector.broadcast %cst_70 : f32 to vector<4x16xf32>
    %102 = arith.addf %101, %100 : vector<4x16xf32>
    %103 = arith.mulf %92, %102 : vector<4x16xf32>
    %c0_71 = arith.constant 0 : index
    %c0_72 = arith.constant 0 : index
    %c0_73 = arith.constant 0 : index
    %104 = vector.load %arg9[%c0_71, %c0_72, %c0_73] : memref<2x4x16xf32, #tpu.memory_space<vmem>>, vector<1x4x16xf32>
    %105 = vector.shape_cast %104 : vector<1x4x16xf32> to vector<4x16xf32>
    %106 = vector.shape_cast %103 : vector<4x16xf32> to vector<1x4x16xf32>
    tpu.vector_store %arg9[%c0_71, %c0_72, %c0_73], %106 {strides = array<i32>} : memref<2x4x16xf32, #tpu.memory_space<vmem>>, vector<1x4x16xf32>,
    %cst_74 = arith.constant 0.000000e+00 : f32
    %107 = vector.broadcast %cst_74 : f32 to vector<8x16xf32>
    %cst_75 = arith.constant 0.000000e+00 : f32
    %108 = vector.broadcast %cst_75 : f32 to vector<8x16xf32>
    %c0_76 = arith.constant 0 : index
    %c0_77 = arith.constant 0 : index
    %109 = vector.load %arg2[%c0_76, %c0_77] : memref<6x16xf32, #tpu.memory_space<vmem>>, vector<1x16xf32>
    %c1_78 = arith.constant 1 : index
    %c0_79 = arith.constant 0 : index
    %c0_80 = arith.constant 0 : index
    %c0_81 = arith.constant 0 : index
    %110 = vector.load %arg1[%c1_78, %c0_79, %c0_80, %c0_81] : memref<2x2x8x16xf32, #tpu.memory_space<vmem>>, vector<1x1x8x16xf32>
    %111 = vector.shape_cast %110 : vector<1x1x8x16xf32> to vector<8x16xf32>
    %112 = vector.broadcast %109 : vector<1x16xf32> to vector<8x16xf32>
    %113 = arith.mulf %112, %111 : vector<8x16xf32>
    %114 = arith.addf %108, %113 : vector<8x16xf32>
    %c3_82 = arith.constant 3 : index
    %c0_83 = arith.constant 0 : index
    %115 = vector.load %arg2[%c3_82, %c0_83] : memref<6x16xf32, #tpu.memory_space<vmem>>, vector<1x16xf32>
    %c1_84 = arith.constant 1 : index
    %c1_85 = arith.constant 1 : index
    %c0_86 = arith.constant 0 : index
    %c0_87 = arith.constant 0 : index
    %116 = vector.load %arg1[%c1_84, %c1_85, %c0_86, %c0_87] : memref<2x2x8x16xf32, #tpu.memory_space<vmem>>, vector<1x1x8x16xf32>
    %117 = vector.shape_cast %116 : vector<1x1x8x16xf32> to vector<8x16xf32>
    %118 = vector.broadcast %115 : vector<1x16xf32> to vector<8x16xf32>
    %119 = arith.mulf %118, %117 : vector<8x16xf32>
    %120 = arith.addf %114, %119 : vector<8x16xf32>
    %c0_88 = arith.constant 0 : index
    %c0_89 = arith.constant 0 : index
    %121 = vector.load %arg7[%c0_88, %c0_89] : memref<16x8xf32, #tpu.memory_space<vmem>>, vector<8x8xf32>
    %cst_90 = arith.constant dense<0.000000e+00> : vector<8x16xf32>
    %122 = tpu.matmul %121, %120, %cst_90 {dimension_numbers = #tpu.dot_dimension_numbers<[1], [0], [0], [1], [0, 0, 1, 1], [], []>} : vector<8x8xf32>, vector<8x16xf32>, vector<8x16xf32> -> vector<8x16xf32>
    %123 = arith.addf %107, %122 : vector<8x16xf32>
    %cst_91 = arith.constant 0.000000e+00 : f32
    %124 = vector.broadcast %cst_91 : f32 to vector<8x16xf32>
    %c1_92 = arith.constant 1 : index
    %c0_93 = arith.constant 0 : index
    %125 = vector.load %arg2[%c1_92, %c0_93] : memref<6x16xf32, #tpu.memory_space<vmem>>, vector<1x16xf32>
    %c1_94 = arith.constant 1 : index
    %c0_95 = arith.constant 0 : index
    %c0_96 = arith.constant 0 : index
    %c0_97 = arith.constant 0 : index
    %126 = vector.load %arg1[%c1_94, %c0_95, %c0_96, %c0_97] : memref<2x2x8x16xf32, #tpu.memory_space<vmem>>, vector<1x1x8x16xf32>
    %127 = vector.shape_cast %126 : vector<1x1x8x16xf32> to vector<8x16xf32>
    %128 = vector.broadcast %125 : vector<1x16xf32> to vector<8x16xf32>
    %129 = arith.mulf %128, %127 : vector<8x16xf32>
    %130 = arith.addf %124, %129 : vector<8x16xf32>
    %c4_98 = arith.constant 4 : index
    %c0_99 = arith.constant 0 : index
    %131 = vector.load %arg2[%c4_98, %c0_99] : memref<6x16xf32, #tpu.memory_space<vmem>>, vector<1x16xf32>
    %c1_100 = arith.constant 1 : index
    %c1_101 = arith.constant 1 : index
    %c0_102 = arith.constant 0 : index
    %c0_103 = arith.constant 0 : index
    %132 = vector.load %arg1[%c1_100, %c1_101, %c0_102, %c0_103] : memref<2x2x8x16xf32, #tpu.memory_space<vmem>>, vector<1x1x8x16xf32>
    %133 = vector.shape_cast %132 : vector<1x1x8x16xf32> to vector<8x16xf32>
    %134 = vector.broadcast %131 : vector<1x16xf32> to vector<8x16xf32>
    %135 = arith.mulf %134, %133 : vector<8x16xf32>
    %136 = arith.addf %130, %135 : vector<8x16xf32>
    %137 = arith.addf %123, %136 : vector<8x16xf32>
    %cst_104 = arith.constant 0.000000e+00 : f32
    %138 = vector.broadcast %cst_104 : f32 to vector<8x16xf32>
    %c2_105 = arith.constant 2 : index
    %c0_106 = arith.constant 0 : index
    %139 = vector.load %arg2[%c2_105, %c0_106] : memref<6x16xf32, #tpu.memory_space<vmem>>, vector<1x16xf32>
    %c1_107 = arith.constant 1 : index
    %c0_108 = arith.constant 0 : index
    %c0_109 = arith.constant 0 : index
    %c0_110 = arith.constant 0 : index
    %140 = vector.load %arg1[%c1_107, %c0_108, %c0_109, %c0_110] : memref<2x2x8x16xf32, #tpu.memory_space<vmem>>, vector<1x1x8x16xf32>
    %141 = vector.shape_cast %140 : vector<1x1x8x16xf32> to vector<8x16xf32>
    %142 = vector.broadcast %139 : vector<1x16xf32> to vector<8x16xf32>
    %143 = arith.mulf %142, %141 : vector<8x16xf32>
    %144 = arith.addf %138, %143 : vector<8x16xf32>
    %c5_111 = arith.constant 5 : index
    %c0_112 = arith.constant 0 : index
    %145 = vector.load %arg2[%c5_111, %c0_112] : memref<6x16xf32, #tpu.memory_space<vmem>>, vector<1x16xf32>
    %c1_113 = arith.constant 1 : index
    %c1_114 = arith.constant 1 : index
    %c0_115 = arith.constant 0 : index
    %c0_116 = arith.constant 0 : index
    %146 = vector.load %arg1[%c1_113, %c1_114, %c0_115, %c0_116] : memref<2x2x8x16xf32, #tpu.memory_space<vmem>>, vector<1x1x8x16xf32>
    %147 = vector.shape_cast %146 : vector<1x1x8x16xf32> to vector<8x16xf32>
    %148 = vector.broadcast %145 : vector<1x16xf32> to vector<8x16xf32>
    %149 = arith.mulf %148, %147 : vector<8x16xf32>
    %150 = arith.addf %144, %149 : vector<8x16xf32>
    %c8_117 = arith.constant 8 : index
    %c0_118 = arith.constant 0 : index
    %151 = vector.load %arg7[%c8_117, %c0_118] : memref<16x8xf32, #tpu.memory_space<vmem>>, vector<8x8xf32>
    %cst_119 = arith.constant dense<0.000000e+00> : vector<8x16xf32>
    %152 = tpu.matmul %151, %150, %cst_119 {dimension_numbers = #tpu.dot_dimension_numbers<[1], [0], [0], [1], [0, 0, 1, 1], [], []>} : vector<8x8xf32>, vector<8x16xf32>, vector<8x16xf32> -> vector<8x16xf32>
    %153 = arith.addf %137, %152 : vector<8x16xf32>
    %c0_120 = arith.constant 0 : index
    %c0_121 = arith.constant 0 : index
    %154 = vector.load %arg3[%c0_120, %c0_121] : memref<1x16xf32, #tpu.memory_space<vmem>>, vector<1x16xf32>
    %155 = vector.broadcast %154 : vector<1x16xf32> to vector<8x16xf32>
    %156 = arith.mulf %153, %155 : vector<8x16xf32>
    %c0_122 = arith.constant 0 : index
    %c0_123 = arith.constant 0 : index
    %157 = vector.load %arg4[%c0_122, %c0_123] : memref<1x16xf32, #tpu.memory_space<vmem>>, vector<1x16xf32>
    %158 = vector.broadcast %157 : vector<1x16xf32> to vector<8x16xf32>
    %159 = arith.addf %156, %158 : vector<8x16xf32>
    %cst_124 = arith.constant 5.000000e-01 : f32
    %160 = vector.broadcast %cst_124 : f32 to vector<8x16xf32>
    %161 = arith.mulf %160, %159 : vector<8x16xf32>
    %cst_125 = arith.constant 4.471500e-02 : f32
    %162 = vector.broadcast %cst_125 : f32 to vector<8x16xf32>
    %163 = arith.mulf %162, %159 : vector<8x16xf32>
    %164 = arith.mulf %163, %159 : vector<8x16xf32>
    %165 = arith.mulf %164, %159 : vector<8x16xf32>
    %166 = arith.addf %159, %165 : vector<8x16xf32>
    %cst_126 = arith.constant 0.797884583 : f32
    %167 = vector.broadcast %cst_126 : f32 to vector<8x16xf32>
    %168 = arith.mulf %167, %166 : vector<8x16xf32>
    %169 = math.tanh %168 : vector<8x16xf32>
    %cst_127 = arith.constant 1.000000e+00 : f32
    %170 = vector.broadcast %cst_127 : f32 to vector<8x16xf32>
    %171 = arith.addf %170, %169 : vector<8x16xf32>
    %172 = arith.mulf %161, %171 : vector<8x16xf32>
    %cst_128 = arith.constant 0.000000e+00 : f32
    %173 = vector.broadcast %cst_128 : f32 to vector<8x16xf32>
    %c0_129 = arith.constant 0 : index
    %c0_130 = arith.constant 0 : index
    %174 = vector.load %arg5[%c0_129, %c0_130] : memref<3x16xf32, #tpu.memory_space<vmem>>, vector<1x16xf32>
    %175 = vector.broadcast %174 : vector<1x16xf32> to vector<8x16xf32>
    %176 = arith.mulf %175, %172 : vector<8x16xf32>
    %c0_131 = arith.constant 0 : index
    %c0_132 = arith.constant 0 : index
    %177 = vector.load %arg7[%c0_131, %c0_132] : memref<16x8xf32, #tpu.memory_space<vmem>>, vector<8x8xf32>
    %cst_133 = arith.constant dense<0.000000e+00> : vector<8x16xf32>
    %178 = tpu.matmul %177, %176, %cst_133 {dimension_numbers = #tpu.dot_dimension_numbers<[1], [0], [0], [1], [0, 0, 1, 1], [], []>} : vector<8x8xf32>, vector<8x16xf32>, vector<8x16xf32> -> vector<8x16xf32>
    %179 = arith.addf %173, %178 : vector<8x16xf32>
    %c1_134 = arith.constant 1 : index
    %c0_135 = arith.constant 0 : index
    %180 = vector.load %arg5[%c1_134, %c0_135] : memref<3x16xf32, #tpu.memory_space<vmem>>, vector<1x16xf32>
    %181 = vector.broadcast %180 : vector<1x16xf32> to vector<8x16xf32>
    %182 = arith.mulf %181, %172 : vector<8x16xf32>
    %183 = arith.addf %179, %182 : vector<8x16xf32>
    %c2_136 = arith.constant 2 : index
    %c0_137 = arith.constant 0 : index
    %184 = vector.load %arg5[%c2_136, %c0_137] : memref<3x16xf32, #tpu.memory_space<vmem>>, vector<1x16xf32>
    %185 = vector.broadcast %184 : vector<1x16xf32> to vector<8x16xf32>
    %186 = arith.mulf %185, %172 : vector<8x16xf32>
    %c8_138 = arith.constant 8 : index
    %c0_139 = arith.constant 0 : index
    %187 = vector.load %arg7[%c8_138, %c0_139] : memref<16x8xf32, #tpu.memory_space<vmem>>, vector<8x8xf32>
    %cst_140 = arith.constant dense<0.000000e+00> : vector<8x16xf32>
    %188 = tpu.matmul %187, %186, %cst_140 {dimension_numbers = #tpu.dot_dimension_numbers<[1], [0], [0], [1], [0, 0, 1, 1], [], []>} : vector<8x8xf32>, vector<8x16xf32>, vector<8x16xf32> -> vector<8x16xf32>
    %189 = arith.addf %183, %188 : vector<8x16xf32>
    %c0_141 = arith.constant 0 : index
    %c0_142 = arith.constant 0 : index
    %190 = vector.load %arg6[%c0_141, %c0_142] : memref<1x16xf32, #tpu.memory_space<vmem>>, vector<1x16xf32>
    %191 = vector.broadcast %190 : vector<1x16xf32> to vector<8x16xf32>
    %192 = arith.addf %189, %191 : vector<8x16xf32>
    %c8_143 = arith.constant 8 : index
    %c0_144 = arith.constant 0 : index
    %193 = vector.load %arg7[%c8_143, %c0_144] : memref<16x8xf32, #tpu.memory_space<vmem>>, vector<8x8xf32>
    %cst_145 = arith.constant dense<0.000000e+00> : vector<8x16xf32>
    %194 = tpu.matmul %193, %192, %cst_145 {dimension_numbers = #tpu.dot_dimension_numbers<[1], [0], [0], [1], [0, 0, 1, 1], [], []>} : vector<8x8xf32>, vector<8x16xf32>, vector<8x16xf32> -> vector<8x16xf32>
    %195 = arith.maximumf %192, %194 : vector<8x16xf32>
    %c0_146 = arith.constant 0 : index
    %c0_147 = arith.constant 0 : index
    %196 = vector.load %arg8[%c0_146, %c0_147] : memref<4x8xf32, #tpu.memory_space<vmem>>, vector<4x8xf32>
    %cst_148 = arith.constant dense<0.000000e+00> : vector<4x16xf32>
    %197 = tpu.matmul %196, %195, %cst_148 {dimension_numbers = #tpu.dot_dimension_numbers<[1], [0], [0], [1], [0, 0, 1, 1], [], []>} : vector<4x8xf32>, vector<8x16xf32>, vector<4x16xf32> -> vector<4x16xf32>
    %cst_149 = arith.constant 5.000000e-01 : f32
    %198 = vector.broadcast %cst_149 : f32 to vector<4x16xf32>
    %199 = arith.mulf %198, %197 : vector<4x16xf32>
    %cst_150 = arith.constant 4.471500e-02 : f32
    %200 = vector.broadcast %cst_150 : f32 to vector<4x16xf32>
    %201 = arith.mulf %200, %197 : vector<4x16xf32>
    %202 = arith.mulf %201, %197 : vector<4x16xf32>
    %203 = arith.mulf %202, %197 : vector<4x16xf32>
    %204 = arith.addf %197, %203 : vector<4x16xf32>
    %cst_151 = arith.constant 0.797884583 : f32
    %205 = vector.broadcast %cst_151 : f32 to vector<4x16xf32>
    %206 = arith.mulf %205, %204 : vector<4x16xf32>
    %207 = math.tanh %206 : vector<4x16xf32>
    %cst_152 = arith.constant 1.000000e+00 : f32
    %208 = vector.broadcast %cst_152 : f32 to vector<4x16xf32>
    %209 = arith.addf %208, %207 : vector<4x16xf32>
    %210 = arith.mulf %199, %209 : vector<4x16xf32>
    %c1_153 = arith.constant 1 : index
    %c0_154 = arith.constant 0 : index
    %c0_155 = arith.constant 0 : index
    %211 = vector.load %arg9[%c1_153, %c0_154, %c0_155] : memref<2x4x16xf32, #tpu.memory_space<vmem>>, vector<1x4x16xf32>
    %212 = vector.shape_cast %211 : vector<1x4x16xf32> to vector<4x16xf32>
    %213 = vector.shape_cast %210 : vector<4x16xf32> to vector<1x4x16xf32>
    tpu.vector_store %arg9[%c1_153, %c0_154, %c0_155], %213 {strides = array<i32>} : memref<2x4x16xf32, #tpu.memory_space<vmem>>, vector<1x4x16xf32>,
    return
  }
  func.func @transform_0(%arg0: i32) -> (i32, i32, i32, i32) {
    %c0_i32 = arith.constant 0 : i32
    %c0_i32_0 = arith.constant 0 : i32
    %c0_i32_1 = arith.constant 0 : i32
    %c0_i32_2 = arith.constant 0 : i32
    return %arg0, %c0_i32, %c0_i32_0, %c0_i32_1 : i32, i32, i32, i32
  }
  func.func @transform_1(%arg0: i32) -> (i32, i32) {
    %c0_i32 = arith.constant 0 : i32
    %c0_i32_0 = arith.constant 0 : i32
    %c0_i32_1 = arith.constant 0 : i32
    return %c0_i32, %c0_i32_0 : i32, i32
  }
  func.func @transform_2(%arg0: i32) -> (i32, i32) {
    %c0_i32 = arith.constant 0 : i32
    %c0_i32_0 = arith.constant 0 : i32
    %c0_i32_1 = arith.constant 0 : i32
    return %c0_i32, %c0_i32_0 : i32, i32
  }
  func.func @transform_3(%arg0: i32) -> (i32, i32) {
    %c0_i32 = arith.constant 0 : i32
    %c0_i32_0 = arith.constant 0 : i32
    %c0_i32_1 = arith.constant 0 : i32
    return %c0_i32, %c0_i32_0 : i32, i32
  }
  func.func @transform_4(%arg0: i32) -> (i32, i32) {
    %c0_i32 = arith.constant 0 : i32
    %c0_i32_0 = arith.constant 0 : i32
    %c0_i32_1 = arith.constant 0 : i32
    return %c0_i32, %c0_i32_0 : i32, i32
  }
  func.func @transform_5(%arg0: i32) -> (i32, i32) {
    %c0_i32 = arith.constant 0 : i32
    %c0_i32_0 = arith.constant 0 : i32
    %c0_i32_1 = arith.constant 0 : i32
    return %c0_i32, %c0_i32_0 : i32, i32
  }
  func.func @transform_6(%arg0: i32) -> (i32, i32) {
    %c0_i32 = arith.constant 0 : i32
    %c0_i32_0 = arith.constant 0 : i32
    %c0_i32_1 = arith.constant 0 : i32
    return %c0_i32, %c0_i32_0 : i32, i32
  }
  func.func @transform_7(%arg0: i32) -> (i32, i32) {
    %c0_i32 = arith.constant 0 : i32
    %c0_i32_0 = arith.constant 0 : i32
    %c0_i32_1 = arith.constant 0 : i32
    return %c0_i32, %c0_i32_0 : i32, i32
  }
  func.func @transform_8(%arg0: i32) -> (i32, i32, i32) {
    %c0_i32 = arith.constant 0 : i32
    %c0_i32_0 = arith.constant 0 : i32
    %c0_i32_1 = arith.constant 0 : i32
    return %arg0, %c0_i32, %c0_i32_0 : i32, i32, i32
  }
}

</mosaic_0001>

<bundles_post_ra>
// kernel: _lambda_.2
= control target key start
LH: loop header
LB: loop body
LE: loop exit
PB: predicated region body
PF: predicated region fallthrough
CT: control target
= control target key end

     0   :  { %13 = vsyncpa [#allocation3], 0  ;;  %s2275_s0 = inlined_call_operand.hbm [shape: f32[4,1,16,32], index: 0, kind: input, shape index: {}]   ;;  %s2276_s1 = inlined_call_operand.vmem [shape: f32[3,32], index: 1, kind: input, shape index: {}]   ;;  %s2277_s2 = inlined_call_operand.vmem [shape: f32[1,32], index: 2, kind: input, shape index: {}]   ;;  %s2278_s3 = inlined_call_operand.vmem [shape: f32[1,32], index: 3, kind: input, shape index: {}]   ;;  %s2279_s4 = inlined_call_operand.vmem [shape: f32[3,32], index: 4, kind: input, shape index: {}]   ;;  %s2280_s5 = inlined_call_operand.vmem [shape: f32[1,32], index: 5, kind: input, shape index: {}]   ;;  %s2281_s6 = inlined_call_operand.vmem [shape: f32[32,16], index: 6, kind: input, shape index: {}]   ;;  %s2282_s7 = inlined_call_operand.vmem [shape: f32[8,16], index: 7, kind: input, shape index: {}]   ;;  %s2283_s8 = inlined_call_operand.vmem [shape: f32[4,8,32], index: 8, kind: output, shape index: {}]  }
   0x1   :  { %15 = vsyncpa [#allocation3 + $0x1], 0  ;;  %s1980_s27 = smov 0   ;;  %s1982_s28 = smov 0  }
   0x2   :  { %s1984_s29 = smov 0   ;;  %s1986_s30 = smov 0  }
   0x3 LB: > { %s1556_s9 = sadd.s32 4294967295, %s1927_s30   ;;  %s2000_s10 = sadd.s32 1, %s1927_s30   ;;  %s1927_s30 = sphi %s1986_s30, %s2290_s30   ;;  %s1923_s29 = sphi %s1984_s29, %s2289_s29   ;;  %s1919_s28 = sphi %s1982_s28, %s2288_s28   ;;  %s1915_s27 = sphi %s1980_s27, %s2287_s27  }
   0x4   : > { %s25_s11 = ssub.s32 %s1927_s30, %s2000_s10  ;;  %s28_s12 = sadd.s32 1, %s1923_s29 }
   0x5   : > { %p26_p0 = scmp.eq.s32.totalorder %s25_s11, 0  ;;  %p35_p1 = scmp.ne.s32.totalorder %s1923_s29, %s1919_s28 }
   0x6   : > { %p36_p2 = scmp.eq.s32.totalorder %s1927_s30, 0  ;;  %p41_p3 = scmp.ne.s32.totalorder %s1919_s28, %s1915_s27 }
   0x7   : > { %s2010_s13 = scalar_select %p26_p0, %s1923_s29, %s28_s12  }
   0x8   : > { %p37_p4 = por %p36_p2, %p35_p1  ;;  %p42_p5 = scmp.eq.s32.totalorder %s1556_s9, 0 }
   0x9   : > { %p1813_p6 = scmp.lt.s32.totalorder %s1927_s30, 2  ;;  %s259_s15 = sand.u32 1, %s1923_s29  }
   0xa   : > { %p2015_p7 = por %p42_p5, %p41_p3  ;;  %s1560_s16 = sshll.u32 %s259_s15, 5 }
   0xb   : > { %s1614_s17 = sshll.u32 %s1927_s30, 9  ;;  %s263_s21 = scalar_lea.vmem [#allocation2], %s1560_s16 }
   0xc   : > { %s2024_s20 = scalar_lea.hbm %s2275_s0, %s1614_s17  ;;  %s271_s22 = sshll.u32 %s263_s21, 4  ;;  %s2026_s22 = int_to_ptr.vmem [resolvable:$true] %s271_s22 }
   0xd   : > { %p2028_p8 = pnand %p1813_p6, %p37_p4  ;;  %s2033_s24 = scalar_lea.sflag [#allocation3], %s259_s15 }
   0xe   : > { %s1863_s25 = scalar_lea.hbm %s2024_s20, 512  ;;  %s1868_s11 = scalar_lea.hbm %s2275_s0, 1024 }
   0xf   : > { %p1864_p10 = scmp.ne.s32.totalorder %s2024_s20, %s1863_s25  ;;  %p1865_p11 = pneg %p2028_p8 }
  0x10   : > { %p1869_p0 = scmp.lt.u32.totalorder %s2024_s20, %s2275_s0  ;;  %p1870_p1 = scmp.lt.u32.totalorder %s1868_s11, %s1863_s25 }
  0x11   : > { %p1866_p12 = pnand %p1865_p11, %p1864_p10  ;;  %p1872_p3 = scmp.lt.u32.totalorder %s1863_s25, %s2024_s20 }
  0x12   : > { %p1871_p2 = por %p1870_p1, %p1869_p0 }
  0x13   : > { %p1867_p13 = pneg %p1866_p12 }
  0x14   : > { %p1873_p4 = por %p1872_p3, %p1871_p2 }
  0x16   : > { %p1874_p5 = pnand %p1873_p4, %p1867_p13 }
  0x18   : > { %1877 = shalt.err (!%p1874_p5)
}
  0x19   : > { %s1878_s15 = scalar_lea.vmem %s2026_s22, 512  ;;  %s1929_s17 = smov [#allocation2]  }
  0x1a   : > { %p1879_p6 = scmp.ne.s32.totalorder %s2026_s22, %s1878_s15  ;;  %s1883_s18 = sshll.u32 %s1929_s17, 4  ;;  %s1884_s18 = int_to_ptr.vmem [resolvable:$false] %s1883_s18 }
  0x1b   : > { %s1885_s19 = scalar_lea.vmem %s1884_s18, 1024  ;;  %p1886_p9 = scmp.lt.s32.totalorder %s2026_s22, %s1884_s18 }
  0x1c   : > { %p1881_p10 = pnand %p1879_p6, %p1865_p11  ;;  %p1887_p0 = scmp.lt.s32.totalorder %s1885_s19, %s1878_s15 }
  0x1e   : > { %p1882_p12 = pneg %p1881_p10  ;;  %p1888_p1 = por %p1887_p0, %p1886_p9 }
  0x20   : > { %p1889_p2 = pnand %p1888_p1, %p1882_p12 }
  0x22   : > { %1892 = shalt.err (!%p1889_p2)
}
  0x23   : > { %s1930_s21 = smov 128   ;;  %s1931_s25 = smov 8  }
  0x24   : > { %1812 = dma.hbm_to_vmem [thread:$0]  (!%p2028_p8), %s2024_s20, 512, %s2026_s22, %s2033_s24, %s1930_s21, %s1930_s21, %s1931_s25  }
  0x25   : > { %p279_p11 = scmp.lt.s32.totalorder %s1927_s30, 3  ;;  %p2286_p13 = scmp.ge.s32.totalorder %s1927_s30, 1 }
  0x27   : > { %p280_p3 = pnand %p2286_p13, %p279_p11 }
  0x28   : > { %s285_s26 = sand.u32 (!%p280_p3), 1, %s1919_s28  }
  0x29   : > { %283 = sbr.rel (%p280_p3) target bundleno = 1507 (0x5e3), region = 52  ;;  %s1565_s27 = sshll.u32 (!%p280_p3), %s285_s26, 5 }
  0x2a   : > { %s286_s11 = scalar_lea.sflag (!%p280_p3), [#allocation3], %s285_s26  ;;  %s2065_s12 = scalar_lea.vmem (!%p280_p3), [#allocation2], %s1565_s27 }
  0x30   : > { %1910 = dma.done.wait (%p2015_p7), %s286_s11, 512  }
  0x31   : > { %1912 = vsyncadd (%p2015_p7), %s286_s11, 4294966784  ;;  %vm351_vm0 = vcmask 130048   ;;  %v2074_v0 = vld [vmem:[%s2276_s1] ss:$0 sm:$0xff]  ;;  %v2080_v2 = vld [vmem:[%s2065_s12 + $0x8] sm:$0xff]  ;;  %vm1933_vm1 = vmmov 0  }
  0x32   : > { %v2077_v1 = vld [vmem:[%s2065_s12] sm:$0xff]  ;;  %v337_v4 = vmul.f32 %v2074_v0, %v2080_v2  ;;  %v2107_v11 = vld [vmem:[%s2281_s6 + $0x8] sm:$0xff]  ;;  %v2112_v12 = vld [vmem:[%s2281_s6 + $0x10] sm:$0xff]  ;;  %s1566_s26 = sshll.u32 %s1556_s9, 1  ;;  %vm907_vm2 = vcmask 261120  }
  0x33   : > { %v336_v3 = vmul.f32 %v2074_v0, %v2077_v1  ;;  %v2089_v5 = vld [vmem:[%s2281_s6] sm:$0xff]  ;;  %v2121_v13 = vld [vmem:[%s2281_s6 + $0x18] sm:$0xff]  ;;  %v2183_v60 = vld [vmem:[%s2065_s12 + $0x10] sm:$0xff]  ;;  %p324_p7 = scmp.lt.s32.totalorder %s1566_s26, 3 }
  0x34   : > { %v2094_v6 = vld [vmem:[%s2276_s1 + $0x2] ss:$0 sm:$0xff]  ;;  %1665 = vmatprep.mubr.msk.f32.mxu0 %vm351_vm0, %v2089_v5  ;;  %1679 = vmatprep.mubr.msk.f32.mxu1 %vm351_vm0, %v2089_v5  ;;  %v2130_v14 = vld [vmem:[%s2276_s1 + $0x1] ss:$0 sm:$0xff]  ;;  %v2139_v18 = vld [vmem:[%s2277_s2] ss:$0 sm:$0xff] }
  0x35   : > { %v438_v7 = vmul.f32 %v2094_v6, %v2077_v1  ;;  %v439_v8 = vmul.f32 %v2094_v6, %v2080_v2  ;;  %v1745_v9 = vpack.c.bf16 %v337_v4, %v336_v3  ;;  %v348_v15 = vmul.f32 %v2130_v14, %v2080_v2  ;;  %v2144_v21 = vld [vmem:[%s2278_s3] ss:$0 sm:$0xff]  ;;  %v2158_v44 = vld [vmem:[%s2279_s4 + $0x2] ss:$0 sm:$0xff]  ;;  %v2173_v53 = vld [vmem:[%s2279_s4 + $0x1] ss:$0 sm:$0xff] }
  0x36   : > { %v347_v16 = vmul.f32 %v2130_v14, %v2077_v1  ;;  %v2153_v43 = vld [vmem:[%s2279_s4] ss:$0 sm:$0xff]  ;;  %v2186_v61 = vld [vmem:[%s2065_s12 + $0x18] sm:$0xff]  ;;  %v917_v4 = vmul.f32 %v2183_v60, %v2074_v0  ;;  %s2292_s26 = smov (!%p324_p7, %s1566_s26), 3 }
  0x37   : > { %v1749_v10 = vpack.c.bf16 %v439_v8, %v438_v7  ;;  %1746 = vmatprep.subr.bf16.mxu0 %v1745_v9  ;;  %v2179_v56 = vld [vmem:[%s2280_s5] ss:$0 sm:$0xff]  ;;  %v918_v7 = vmul.f32 %v2186_v61, %v2074_v0  ;;  %v1932_v0 = vmov 0.0|0.0   ;;  %s1567_s27 = sshll.u32 %s2292_s26, 3 }
  0x38   : > { %1748 = vmatpush3.bf16.msra.mxu0 %v1745_v9  ;;  %s2246_s22 = scalar_lea.vmem %s2283_s8, %s1567_s27 }
  0x39   : > { %1750 = vmatprep.subr.bf16.mxu0 %v1749_v10 }
  0x3b   : > { %1666 = vmatmul.mubr.msk.f32.vlgmr.msra.gmra.mrb[0].mxu0 %vm351_vm0, %v2107_v11 }
  0x3c   : > { %1752 = vmatpush3.bf16.msra.mxu0 %v1749_v10  ;;  %1672 = vmatprep.mubr.msk.f32.mxu0 %vm351_vm0, %v2112_v12 }
  0x43   : > { %1673 = vmatmul.mubr.msk.f32.vlgmr.msra.gmra.mrb[0].mxu0 %vm351_vm0, %v2121_v13 }
  0x44   : > { %1693 = vmatprep.mubr.msk.f32.mxu0 %vm351_vm0, %v2112_v12 }
 0x116   : > { %v1674_v17 = vpop.f32.mrb[0].mxu0 }
 0x117   : > { %v1791_v19 = vadd.f32 %v1674_v17, %v348_v15  ;;  %v516_v20 = vpop.f32.mrb[1].mxu0  ;;  %v1768_v15 = vpack.c.bf16 %v918_v7, %v917_v4  ;;  %v1019_v17 = vmul.f32 %v2186_v61, %v2094_v6 }
 0x118   : > { %v1792_v22 = vadd.f32 %v516_v20, %v347_v16  ;;  %v1018_v16 = vmul.f32 %v2183_v60, %v2094_v6 }
 0x119   : > { %v535_v23 = vmul.f32 %v1791_v19, %v2139_v18 }
 0x11a   : > { %v534_v24 = vmul.f32 %v1792_v22, %v2139_v18  ;;  %v1772_v19 = vpack.c.bf16 %v1019_v17, %v1018_v16 }
 0x11b   : > { %v544_v25 = vadd.f32 %v2144_v21, %v535_v23 }
 0x11c   : > { %v543_v26 = vadd.f32 %v2144_v21, %v534_v24  ;;  %v2216_v24 = vld [vmem:[%s2282_s7] sm:$0xff] }
 0x11d   : > { %v548_v27 = vmul.f32 0.044715, %v544_v25  ;;  %v546_v39 = vmul.f32 0.5, %v544_v25 }
 0x11e   : > { %v547_v28 = vmul.f32 0.044715, %v543_v26  ;;  %v545_v41 = vmul.f32 0.5, %v543_v26 }
 0x11f   : > { %v550_v29 = vmul.f32 %v548_v27, %v544_v25 }
 0x120   : > { %v549_v30 = vmul.f32 %v547_v28, %v543_v26 }
 0x121   : > { %v552_v31 = vmul.f32 %v550_v29, %v544_v25 }
 0x122   : > { %v551_v32 = vmul.f32 %v549_v30, %v543_v26 }
 0x123   : > { %v554_v33 = vadd.f32 %v552_v31, %v544_v25  ;;  %v929_v25 = vmul.f32 %v2186_v61, %v2130_v14 }
 0x124   : > { %v553_v34 = vadd.f32 %v551_v32, %v543_v26  ;;  %v928_v26 = vmul.f32 %v2183_v60, %v2130_v14 }
 0x125   : > { %v556_v35 = vmul.f32 0.7978846, %v554_v33 }
 0x126   : > { %v555_v36 = vmul.f32 0.7978846, %v553_v34 }
 0x127   : > { %1851 = vtanh.f32 %v556_v35 }
 0x128   : > { %1853 = vtanh.f32 %v555_v36 }
 0x131   : > { %v1852_v37 = vpop.eup %1851 }
 0x132   : > { %v1854_v38 = vpop.eup %1853  ;;  %v560_v40 = vadd.f32 1.0, %v1852_v37 }
 0x133   : > { %v559_v42 = vadd.f32 1.0, %v1854_v38 }
 0x134   : > { %v562_v45 = vmul.f32 %v560_v40, %v546_v39 }
 0x135   : > { %v561_v46 = vmul.f32 %v559_v42, %v545_v41 }
 0x136   : > { %v569_v47 = vmul.f32 %v2153_v43, %v562_v45  ;;  %v658_v48 = vmul.f32 %v2158_v44, %v562_v45  ;;  %v576_v54 = vmul.f32 %v2173_v53, %v562_v45 }
 0x137   : > { %v568_v49 = vmul.f32 %v2153_v43, %v561_v46  ;;  %v657_v50 = vmul.f32 %v2158_v44, %v561_v46  ;;  %v575_v57 = vmul.f32 %v2173_v53, %v561_v46 }
 0x139   : > { %v1753_v51 = vpack.c.bf16 %v569_v47, %v568_v49  ;;  %v1757_v52 = vpack.c.bf16 %v658_v48, %v657_v50 }
 0x13b   : > { %1754 = vmatprep.subr.bf16.mxu1 %v1753_v51 }
 0x13c   : > { %1756 = vmatpush3.bf16.msra.mxu1 %v1753_v51 }
 0x13d   : > { %1758 = vmatprep.subr.bf16.mxu1 %v1757_v52 }
 0x13f   : > { %1680 = vmatmul.mubr.msk.f32.vlgmr.msra.gmra.mrb[0].mxu1 %vm351_vm0, %v2107_v11 }
 0x140   : > { %1760 = vmatpush3.bf16.msra.mxu1 %v1757_v52  ;;  %1686 = vmatprep.mubr.msk.f32.mxu1 %vm351_vm0, %v2112_v12 }
 0x141   : > { %1765 = vmatprep.subr.bf16.mxu1 %v1932_v0 }
 0x147   : > { %1687 = vmatmul.mubr.msk.f32.vlgmr.msra.gmra.mrb[0].mxu1 %vm351_vm0, %v2121_v13 }
 0x21a   : > { %v1688_v55 = vpop.f32.mrb[0].mxu1 }
 0x21b   : > { %v1793_v58 = vadd.f32 %v1688_v55, %v576_v54  ;;  %v725_v59 = vpop.f32.mrb[1].mxu1 }
 0x21c   : > { %v1794_v62 = vadd.f32 %v725_v59, %v575_v57 }
 0x21d   : > { %v744_v63 = vadd.f32 %v1793_v58, %v2179_v56 }
 0x21e   : > { %v743_v3 = vadd.f32 %v1794_v62, %v2179_v56 }
 0x21f   : > { %v746_v8 = vadd.f32 %v744_v63, %v2080_v2 }
 0x220   : > { %v745_v9 = vadd.f32 %v743_v3, %v2077_v1  ;;  %v1934_v1 = vmov 0.0  }
 0x221   : > { %1700 = vmatprep.mubr.msk.f32.mxu1 %vm1933_vm1, %v1934_v1 }
 0x222   : > { %v1761_v10 = vpack.c.bf16 %v746_v8, %v745_v9 }
 0x224   : > { %1762 = vmatprep.subr.bf16.mxu0 %v1761_v10 }
 0x225   : > { %1764 = vmatpush3.bf16.msra.mxu0 %v1761_v10 }
 0x226   : > { %1769 = vmatprep.subr.bf16.mxu0 %v1768_v15 }
 0x228   : > { %1694 = vmatmul.mubr.msk.f32.vlgmr.msra.gmra.mrb[2].mxu0 %vm351_vm0, %v2121_v13 }
 0x229   : > { %1771 = vmatpush3.bf16.msra.mxu0 %v1768_v15  ;;  %1707 = vmatprep.mubr.msk.f32.mxu0 %vm351_vm0, %v2089_v5 }
 0x22a   : > { %1773 = vmatprep.subr.bf16.mxu0 %v1772_v19 }
 0x22c   : > { %1708 = vmatmul.mubr.msk.f32.vlgmr.msra.gmra.mrb[4].mxu0 %vm351_vm0, %v2107_v11 }
 0x22d   : > { %1775 = vmatpush3.bf16.msra.mxu0 %v1772_v19  ;;  %1714 = vmatprep.mubr.msk.f32.mxu0 %vm351_vm0, %v2112_v12 }
 0x234   : > { %1715 = vmatmul.mubr.msk.f32.vlgmr.msra.gmra.mrb[4].mxu0 %vm351_vm0, %v2121_v13 }
 0x235   : > { %1735 = vmatprep.mubr.msk.f32.mxu0 %vm351_vm0, %v2112_v12 }
 0x2fb   : > { %v1695_v2 = vpop.f32.mrb[2].mxu0 }
 0x2fc   : > { %v823_v6 = vmax.f32 %v746_v8, %v1695_v2  ;;  %v813_v20 = vpop.f32.mrb[3].mxu0 }
 0x2fd   : > { %v822_v22 = vmax.f32 %v745_v9, %v813_v20 }
 0x2ff   : > { %v1766_v23 = vpack.c.bf16 %v823_v6, %v822_v22 }
 0x301   : > { %1767 = vmatpush3.bf16.msra.mxu1 %v1766_v23 }
 0x304   : > { %1701 = vmatmul.mubr.msk.f32.vlgmr.msra.gmra.mrb[2].mxu1 %vm351_vm0, %v2216_v24 }
 0x305   : > { %1721 = vmatprep.mubr.msk.f32.mxu1 %vm351_vm0, %v2089_v5 }
 0x307   : > { %v1716_v27 = vpop.f32.mrb[4].mxu0 }
 0x308   : > { %v1795_v28 = vadd.f32 %v1716_v27, %v929_v25  ;;  %v1096_v29 = vpop.f32.mrb[5].mxu0 }
 0x309   : > { %v1796_v30 = vadd.f32 %v1096_v29, %v928_v26 }
 0x30a   : > { %v1115_v31 = vmul.f32 %v1795_v28, %v2139_v18 }
 0x30b   : > { %v1114_v32 = vmul.f32 %v1796_v30, %v2139_v18 }
 0x30c   : > { %v1124_v33 = vadd.f32 %v2144_v21, %v1115_v31 }
 0x30d   : > { %v1123_v34 = vadd.f32 %v2144_v21, %v1114_v32 }
 0x30e   : > { %v1128_v35 = vmul.f32 0.044715, %v1124_v33  ;;  %v1126_v47 = vmul.f32 0.5, %v1124_v33 }
 0x30f   : > { %v1127_v36 = vmul.f32 0.044715, %v1123_v34  ;;  %v1125_v48 = vmul.f32 0.5, %v1123_v34 }
 0x310   : > { %v1130_v37 = vmul.f32 %v1128_v35, %v1124_v33 }
 0x311   : > { %v1129_v38 = vmul.f32 %v1127_v36, %v1123_v34 }
 0x312   : > { %v1132_v14 = vmul.f32 %v1130_v37, %v1124_v33 }
 0x313   : > { %v1131_v39 = vmul.f32 %v1129_v38, %v1123_v34 }
 0x314   : > { %v1134_v40 = vadd.f32 %v1132_v14, %v1124_v33 }
 0x315   : > { %v1133_v5 = vadd.f32 %v1131_v39, %v1123_v34 }
 0x316   : > { %v1136_v41 = vmul.f32 0.7978846, %v1134_v40 }
 0x317   : > { %v1135_v42 = vmul.f32 0.7978846, %v1133_v5 }
 0x318   : > { %1855 = vtanh.f32 %v1136_v41 }
 0x319   : > { %1857 = vtanh.f32 %v1135_v42 }
 0x322   : > { %v1856_v45 = vpop.eup %1855 }
 0x323   : > { %v1858_v46 = vpop.eup %1857  ;;  %v1140_v18 = vadd.f32 1.0, %v1856_v45 }
 0x324   : > { %v1139_v49 = vadd.f32 1.0, %v1858_v46 }
 0x325   : > { %v1142_v50 = vmul.f32 %v1140_v18, %v1126_v47 }
 0x326   : > { %v1141_v21 = vmul.f32 %v1139_v49, %v1125_v48 }
 0x327   : > { %v1149_v51 = vmul.f32 %v2153_v43, %v1142_v50  ;;  %v1238_v52 = vmul.f32 %v2158_v44, %v1142_v50  ;;  %v1156_v9 = vmul.f32 %v2173_v53, %v1142_v50 }
 0x328   : > { %v1148_v54 = vmul.f32 %v2153_v43, %v1141_v21  ;;  %v1237_v55 = vmul.f32 %v2158_v44, %v1141_v21  ;;  %v1155_v15 = vmul.f32 %v2173_v53, %v1141_v21 }
 0x32a   : > { %v1776_v57 = vpack.c.bf16 %v1149_v51, %v1148_v54  ;;  %v1780_v58 = vpack.c.bf16 %v1238_v52, %v1237_v55 }
 0x32c   : > { %1777 = vmatprep.subr.bf16.mxu1 %v1776_v57 }
 0x32d   : > { %1779 = vmatpush3.bf16.msra.mxu1 %v1776_v57 }
 0x32e   : > { %1781 = vmatprep.subr.bf16.mxu1 %v1780_v58 }
 0x330   : > { %1722 = vmatmul.mubr.msk.f32.vlgmr.msra.gmra.mrb[4].mxu1 %vm351_vm0, %v2107_v11 }
 0x331   : > { %1783 = vmatpush3.bf16.msra.mxu1 %v1780_v58  ;;  %1728 = vmatprep.mubr.msk.f32.mxu1 %vm351_vm0, %v2112_v12 }
 0x332   : > { %1788 = vmatprep.subr.bf16.mxu1 %v1932_v0 }
 0x338   : > { %1729 = vmatmul.mubr.msk.f32.vlgmr.msra.gmra.mrb[4].mxu1 %vm351_vm0, %v2121_v13 }
 0x339   : > { %1742 = vmatprep.mubr.msk.f32.mxu1 %vm1933_vm1, %v1934_v1 }
 0x3d7   : > { %v894_v43 = vpop.f32.mrb[2].mxu1 }
 0x3d8   : > { %v899_v44 = vmul.f32 0.044715, %v894_v43  ;;  %v1702_v59 = vpop.f32.mrb[3].mxu1  ;;  %v898_v11 = vmul.f32 0.5, %v894_v43 }
 0x3da   : > { %v900_v62 = vmul.f32 %v899_v44, %v894_v43 }
 0x3dc   : > { %v901_v63 = vmul.f32 %v900_v62, %v894_v43 }
 0x3de   : > { %v902_v3 = vadd.f32 %v901_v63, %v894_v43 }
 0x3e0   : > { %v903_v4 = vmul.f32 0.7978846, %v902_v3 }
 0x3e2   : > { %1859 = vtanh.f32 %v903_v4 }
 0x3ec   : > { %v1860_v12 = vpop.eup %1859 }
 0x3ed   : > { %v905_v7 = vadd.f32 1.0, %v1860_v12 }
 0x3ef   : > { %v906_v8 = vmul.f32 %v905_v7, %v898_v11 }
 0x3f1   : > { %908 = vst.msk [vmem:[%s2246_s22] sm:$0xff] %vm907_vm2, %v906_v8 }
 0x40b   : > { %v1730_v10 = vpop.f32.mrb[4].mxu1 }
 0x40c   : > { %v1797_v16 = vadd.f32 %v1730_v10, %v1156_v9  ;;  %v1305_v17 = vpop.f32.mrb[5].mxu1 }
 0x40d   : > { %v1798_v19 = vadd.f32 %v1305_v17, %v1155_v15 }
 0x40e   : > { %v1324_v0 = vadd.f32 %v1797_v16, %v2179_v56 }
 0x40f   : > { %v1323_v1 = vadd.f32 %v1798_v19, %v2179_v56 }
 0x410   : > { %v1326_v2 = vadd.f32 %v2186_v61, %v1324_v0 }
 0x411   : > { %v1325_v6 = vadd.f32 %v2183_v60, %v1323_v1 }
 0x413   : > { %v1784_v20 = vpack.c.bf16 %v1326_v2, %v1325_v6 }
 0x415   : > { %1785 = vmatprep.subr.bf16.mxu0 %v1784_v20 }
 0x416   : > { %1787 = vmatpush3.bf16.msra.mxu0 %v1784_v20 }
 0x419   : > { %1736 = vmatmul.mubr.msk.f32.vlgmr.msra.gmra.mrb[6].mxu0 %vm351_vm0, %v2121_v13 }
 0x4ec   : > { %v1737_v22 = vpop.f32.mrb[6].mxu0 }
 0x4ed   : > { %v1403_v23 = vmax.f32 %v1326_v2, %v1737_v22  ;;  %v1393_v53 = vpop.f32.mrb[7].mxu0 }
 0x4ee   : > { %v1402_v25 = vmax.f32 %v1325_v6, %v1393_v53 }
 0x4f0   : > { %v1789_v26 = vpack.c.bf16 %v1403_v23, %v1402_v25 }
 0x4f2   : > { %1790 = vmatpush3.bf16.msra.mxu1 %v1789_v26 }
 0x4f5   : > { %1743 = vmatmul.mubr.msk.f32.vlgmr.msra.gmra.mrb[6].mxu1 %vm351_vm0, %v2216_v24 }
 0x5c8   : > { %v1474_v56 = vpop.f32.mrb[6].mxu1 }
 0x5c9   : > { %v1479_v61 = vmul.f32 0.044715, %v1474_v56  ;;  %v1744_v27 = vpop.f32.mrb[7].mxu1  ;;  %v1478_v13 = vmul.f32 0.5, %v1474_v56 }
 0x5cb   : > { %v1480_v60 = vmul.f32 %v1479_v61, %v1474_v56 }
 0x5cd   : > { %v1481_v28 = vmul.f32 %v1480_v60, %v1474_v56 }
 0x5cf   : > { %v1482_v29 = vadd.f32 %v1481_v28, %v1474_v56 }
 0x5d1   : > { %v1483_v30 = vmul.f32 0.7978846, %v1482_v29 }
 0x5d3   : > { %1861 = vtanh.f32 %v1483_v30 }
 0x5dd   : > { %v1862_v31 = vpop.eup %1861 }
 0x5de   : > { %v1485_v32 = vadd.f32 1.0, %v1862_v31 }
 0x5e0   : > { %v1486_v33 = vmul.f32 %v1485_v32, %v1478_v13 }
 0x5e2   : > { %1610 = vst.msk [vmem:[%s2246_s22 + $0x8] sm:$0xff] %vm907_vm2, %v1486_v33 }
 0x5e3 PF: > { %p18_p8 = scmp.ge.s32.totalorder %s2000_s10, 4   ;;  %s2287_s27 = smov %s1919_s28 }
 0x5e4   : > { %s2288_s28 = smov %s1923_s29  ;;  %s2289_s29 = smov %s2010_s13 }
 0x5e5   : > { %s2290_s30 = smov %s2000_s10  ;;  %20 = sbr.rel (!%p18_p8) target bundleno = 3 (0x3), region = 94 }
 0x5ec   :  { %1511 = vsyncpa [#allocation3], 1 }
 0x5ed   :  { %1513 = vsyncpa [#allocation3 + $0x1], 1 }

// kernel: _lambda_.3
= control target key start
LH: loop header
LB: loop body
LE: loop exit
PB: predicated region body
PF: predicated region fallthrough
CT: control target
= control target key end

     0   :  { %13 = vsyncpa [#allocation3], 0  ;;  %s2059_s0 = inlined_call_operand.vmem [shape: f32[4,2,8,16], index: 0, kind: input, shape index: {}]   ;;  %s2060_s1 = inlined_call_operand.vmem [shape: f32[6,16], index: 1, kind: input, shape index: {}]   ;;  %s2061_s2 = inlined_call_operand.vmem [shape: f32[1,16], index: 2, kind: input, shape index: {}]   ;;  %s2062_s3 = inlined_call_operand.vmem [shape: f32[1,16], index: 3, kind: input, shape index: {}]   ;;  %s2063_s4 = inlined_call_operand.vmem [shape: f32[3,16], index: 4, kind: input, shape index: {}]   ;;  %s2064_s5 = inlined_call_operand.vmem [shape: f32[1,16], index: 5, kind: input, shape index: {}]   ;;  %s2065_s6 = inlined_call_operand.vmem [shape: f32[16,8], index: 6, kind: input, shape index: {}]   ;;  %s2066_s7 = inlined_call_operand.vmem [shape: f32[4,8], index: 7, kind: input, shape index: {}]   ;;  %s2067_s8 = inlined_call_operand.hbm [shape: f32[4,4,16], index: 8, kind: output, shape index: {}]  }
   0x1   :  { %15 = vsyncpa [#allocation3 + $0x1], 0  ;;  %s1782_s27 = smov 0   ;;  %s1784_s28 = smov 0  }
   0x2   :  { %s1786_s29 = smov 0   ;;  %s1788_s30 = smov 0  }
   0x3 LB: > { %s1803_s9 = sadd.s32 4294967295, %s1730_s30   ;;  %s1472_s10 = sadd.s32 4294967294, %s1730_s30   ;;  %s1730_s30 = sphi %s1788_s30, %s2073_s30   ;;  %s1726_s29 = sphi %s1786_s29, %s2072_s29   ;;  %s1722_s28 = sphi %s1784_s28, %s2071_s28   ;;  %s1718_s27 = sphi %s1782_s27, %s2070_s27  }
   0x4   : > { %s1807_s11 = sadd.s32 1, %s1730_s30   ;;  %s201_s12 = sadd.s32 1, %s1726_s29 }
   0x5   : > { %s198_s13 = ssub.s32 %s1730_s30, %s1807_s11  ;;  %p211_p0 = scmp.ne.s32.totalorder %s1726_s29, %s1722_s28 }
   0x6   : > { %p199_p1 = scmp.eq.s32.totalorder %s198_s13, 0  ;;  %p212_p2 = scmp.eq.s32.totalorder %s1803_s9, 1 }
   0x7   : > { %p217_p3 = scmp.ne.s32.totalorder %s1722_s28, %s1718_s27  ;;  %p218_p4 = scmp.eq.s32.totalorder %s1472_s10, 1 }
   0x8   : > { %s1818_s14 = scalar_select %p199_p1, %s1726_s29, %s201_s12  }
   0x9   : > { %p1820_p5 = por %p212_p2, %p211_p0  ;;  %p1824_p6 = por %p218_p4, %p217_p3 }
   0xa   : > { %p1475_p7 = scmp.ge.s32.totalorder %s1730_s30, 1  ;;  %p267_p8 = scmp.lt.s32.totalorder %s1730_s30, 3 }
   0xc   : > { %p268_p9 = pnand %p1475_p7, %p267_p8 }
   0xd   : > { %s1477_s17 = sshll.u32 (!%p268_p9), %s1803_s9, 1  ;;  %v1732_v0 = vmov (!%p268_p9), 0.0   ;;  %vm1733_vm0 = vmmov (!%p268_p9), 0   ;;  %v1840_v1 = vld [vmem:[%s2060_s1] ss:$0 sm:$0xff] (!%p268_p9)  ;;  %vm342_vm1 = vcmask (!%p268_p9), 64512  }
   0xe   : > { %271 = sbr.rel (%p268_p9) target bundleno = 1451 (0x5ab), region = 52  ;;  %1551 = vmatprep.subr.mxu0 (!%p268_p9), %v1732_v0  ;;  %p303_p10 = scmp.lt.s32.totalorder (!%p268_p9), %s1477_s17, 3  ;;  %1561 = vmatprep.subr.mxu1 (!%p268_p9), %v1732_v0  ;;  %v1845_v2 = vld [vmem:[%s2060_s1 + $0x3] ss:$0 sm:$0xff] (!%p268_p9)  ;;  %v1850_v3 = vld [vmem:[%s2060_s1 + $0x2] ss:$0 sm:$0xff] (!%p268_p9) }
   0xf   : > { %1553 = vmatprep.mubr.msk.f32.mxu0 (!%p268_p9), %vm1733_vm0, %v1732_v0  ;;  %1563 = vmatprep.mubr.msk.f32.mxu1 (!%p268_p9), %vm1733_vm0, %v1732_v0  ;;  %v1855_v4 = vld [vmem:[%s2060_s1 + $0x5] ss:$0 sm:$0xff] (!%p268_p9)  ;;  %v1865_v5 = vld [vmem:[%s2060_s1 + $0x1] ss:$0 sm:$0xff] (!%p268_p9)  ;;  %v1870_v6 = vld [vmem:[%s2060_s1 + $0x4] ss:$0 sm:$0xff] (!%p268_p9) }
  0x10   : > { %v1883_v16 = vld [vmem:[%s2065_s6] sm:$0xff] (!%p268_p9)  ;;  %v1894_v19 = vld [vmem:[%s2065_s6 + $0x8] sm:$0xff] (!%p268_p9)  ;;  %s299_s26 = sand.u32 (!%p268_p9), 1, %s1722_s28   ;;  %vm851_vm2 = vcmask (!%p268_p9), 125952  }
  0x11   : > { %v1903_v21 = vld [vmem:[%s2061_s2] ss:$0 sm:$0xff] (!%p268_p9)  ;;  %v1920_v37 = vld [vmem:[%s2063_s4 + $0x2] ss:$0 sm:$0xff] (!%p268_p9)  ;;  %v1937_v40 = vld [vmem:[%s2063_s4 + $0x1] ss:$0 sm:$0xff] (!%p268_p9) }
  0x12   : > { %v1908_v24 = vld [vmem:[%s2062_s3] ss:$0 sm:$0xff] (!%p268_p9)  ;;  %s1476_s10 = sshll.u32 (!%p268_p9), %s299_s26, 3  ;;  %s2018_s24 = scalar_lea.sflag (!%p268_p9), [#allocation3], %s299_s26 }
  0x13   : > { %v1915_v35 = vld [vmem:[%s2063_s4] ss:$0 sm:$0xff] (!%p268_p9)  ;;  %s1993_s12 = scalar_lea.vmem (!%p268_p9), [#allocation2], %s1476_s10 }
  0x14   : > { %v1947_v50 = vld [vmem:[%s2064_s5] ss:$0 sm:$0xff] (!%p268_p9)  ;;  %s1410_s20 = sshll.u32 (!%p268_p9), %s1993_s12, 4  ;;  %s2012_s20 = int_to_ptr.vmem [resolvable:$true] %s1410_s20 }
  0x15   : > { %s2075_s17 = smov (!%p303_p10, %s1477_s17), 3  ;;  %v768_v61 = vld [vmem:[%s2066_s7] sm:$0xf] }
  0x16   : > { %s1525_s22 = sshll.u32 %s2075_s17, 4  ;;  %s1526_s17 = sshll.u32 %s1803_s9, 7 }
  0x17   : > { %s1860_s13 = scalar_lea.vmem %s2059_s0, %s1525_s22  ;;  %s2010_s23 = scalar_lea.hbm %s2067_s8, %s1526_s17 }
  0x18   : > { %v311_v7 = vld [vmem:[%s1860_s13] sm:$0xff]  ;;  %v1481_v8 = vld [vmem:[%s1860_s13 + $0x8] sm:$0xff]  ;;  %v1499_v43 = vld [vmem:[%s1860_s13 + $0x10] sm:$0xff]  ;;  %s1668_s9 = scalar_lea.vmem %s2012_s20, 128 }
  0x19   : > { %v316_v9 = vmul.f32 %v1840_v1, %v311_v7  ;;  %v325_v10 = vmul.f32 %v1845_v2, %v1481_v8  ;;  %v421_v11 = vmul.f32 %v1850_v3, %v311_v7  ;;  %v428_v12 = vmul.f32 %v1855_v4, %v1481_v8  ;;  %v1501_v44 = vld [vmem:[%s1860_s13 + $0x18] sm:$0xff]  ;;  %p1669_p11 = scmp.ne.s32.totalorder %s2012_s20, %s1668_s9  ;;  %s1734_s13 = smov [#allocation2]  }
  0x1a   : > { %v333_v13 = vmul.f32 %v1865_v5, %v311_v7  ;;  %v340_v14 = vmul.f32 %v1870_v6, %v1481_v8  ;;  %v860_v47 = vmul.f32 %v1499_v43, %v1840_v1  ;;  %v869_v48 = vmul.f32 %v1501_v44, %v1845_v2  ;;  %s1672_s25 = sshll.u32 %s1734_s13, 4  ;;  %s1673_s25 = int_to_ptr.vmem [resolvable:$false] %s1672_s25 }
  0x1b   : > { %v326_v15 = vadd.f32 %v325_v10, %v316_v9  ;;  %v429_v17 = vadd.f32 %v428_v12, %v421_v11  ;;  %v964_v55 = vmul.f32 %v1499_v43, %v1850_v3  ;;  %v971_v56 = vmul.f32 %v1501_v44, %v1855_v4  ;;  %p1670_p12 = pnand %p1669_p11, %p1820_p5  ;;  %s1674_s10 = scalar_lea.vmem %s1673_s25, 256 }
  0x1c   : > { %v341_v18 = vadd.f32 %v340_v14, %v333_v13  ;;  %v870_v54 = vadd.f32 %v869_v48, %v860_v47  ;;  %v877_v62 = vmul.f32 %v1499_v43, %v1865_v5  ;;  %v884_v63 = vmul.f32 %v1501_v44, %v1870_v6  ;;  %p1675_p0 = scmp.lt.s32.totalorder %s2012_s20, %s1673_s25  ;;  %p1676_p1 = scmp.lt.s32.totalorder %s1674_s10, %s1668_s9 }
  0x1d   : > { %1552 = vmatpush3.msra.mxu0 %v326_v15  ;;  %v972_v57 = vadd.f32 %v971_v56, %v964_v55  ;;  %p1671_p13 = pneg %p1670_p12 }
  0x1e   : > { %1554 = vmatmul.mubr.msk.f32.vlgmr.msra.gmra.mrb[0].mxu0 %vm342_vm1, %v1883_v16  ;;  %1556 = vmatprep.subr.mxu0 %v1732_v0  ;;  %v885_v1 = vadd.f32 %v884_v63, %v877_v62  ;;  %p1677_p2 = por %p1676_p1, %p1675_p0 }
  0x1f   : > { %1557 = vmatpush3.msra.mxu0 %v429_v17  ;;  %1558 = vmatprep.mubr.msk.f32.mxu0 %vm1733_vm0, %v1732_v0 }
  0x20   : > { %1571 = vmatprep.subr.mxu0 %v1732_v0  ;;  %p1678_p3 = pnand %p1677_p2, %p1671_p13 }
  0x26   : > { %1559 = vmatmul.mubr.msk.f32.vlgmr.msra.gmra.mrb[0].mxu0 %vm342_vm1, %v1894_v19 }
  0x27   : > { %1573 = vmatprep.mubr.msk.f32.mxu0 %vm1733_vm0, %v1732_v0 }
  0xf9   : > { %v500_v20 = vpop.f32.mrb[0].mxu0 }
  0xfa   : > { %v1611_v22 = vadd.f32 %v500_v20, %v341_v18  ;;  %v1560_v23 = vpop.f32.mrb[1].mxu0 }
  0xfc   : > { %v512_v25 = vmul.f32 %v1611_v22, %v1903_v21 }
  0xfe   : > { %v520_v26 = vadd.f32 %v1908_v24, %v512_v25 }
 0x100   : > { %v522_v27 = vmul.f32 0.044715, %v520_v26  ;;  %v521_v33 = vmul.f32 0.5, %v520_v26 }
 0x102   : > { %v523_v28 = vmul.f32 %v522_v27, %v520_v26 }
 0x104   : > { %v524_v29 = vmul.f32 %v523_v28, %v520_v26 }
 0x106   : > { %v525_v30 = vadd.f32 %v524_v29, %v520_v26 }
 0x108   : > { %v526_v31 = vmul.f32 0.7978846, %v525_v30 }
 0x10a   : > { %1660 = vtanh.f32 %v526_v31 }
 0x114   : > { %v1661_v32 = vpop.eup %1660 }
 0x115   : > { %v528_v34 = vadd.f32 1.0, %v1661_v32 }
 0x117   : > { %v529_v36 = vmul.f32 %v528_v34, %v521_v33 }
 0x119   : > { %v535_v38 = vmul.f32 %v1915_v35, %v529_v36  ;;  %v617_v39 = vmul.f32 %v1920_v37, %v529_v36  ;;  %v541_v41 = vmul.f32 %v1937_v40, %v529_v36 }
 0x11b   : > { %1562 = vmatpush3.msra.mxu1 %v535_v38 }
 0x11c   : > { %1564 = vmatmul.mubr.msk.f32.vlgmr.msra.gmra.mrb[0].mxu1 %vm342_vm1, %v1883_v16  ;;  %1566 = vmatprep.subr.mxu1 %v1732_v0 }
 0x11d   : > { %1567 = vmatpush3.msra.mxu1 %v617_v39  ;;  %1568 = vmatprep.mubr.msk.f32.mxu1 %vm1733_vm0, %v1732_v0 }
 0x11e   : > { %1576 = vmatprep.subr.mxu1 %v1732_v0 }
 0x120   : > { %1569 = vmatmul.mubr.msk.f32.vlgmr.msra.gmra.mrb[2].mxu1 %vm342_vm1, %v1894_v19 }
 0x121   : > { %1578 = vmatprep.mubr.msk.f32.mxu1 %vm1733_vm0, %v1732_v0 }
 0x1ef   : > { %v608_v42 = vpop.f32.mrb[0].mxu1 }
 0x1f0   : > { %v609_v45 = vadd.f32 %v608_v42, %v541_v41  ;;  %v1565_v46 = vpop.f32.mrb[1].mxu1 }
 0x1f3   : > { %v684_v49 = vpop.f32.mrb[2].mxu1 }
 0x1f4   : > { %v688_v51 = vadd.f32 %v684_v49, %v609_v45  ;;  %v1570_v52 = vpop.f32.mrb[3].mxu1 }
 0x1f6   : > { %v696_v53 = vadd.f32 %v1947_v50, %v688_v51 }
 0x1f8   : > { %1572 = vmatpush3.msra.mxu0 %v696_v53 }
 0x1f9   : > { %1574 = vmatmul.mubr.msk.f32.vlgmr.msra.gmra.mrb[2].mxu0 %vm342_vm1, %v1894_v19  ;;  %1581 = vmatprep.subr.mxu0 %v1732_v0 }
 0x1fa   : > { %1582 = vmatpush3.msra.mxu0 %v870_v54  ;;  %1583 = vmatprep.mubr.msk.f32.mxu0 %vm1733_vm0, %v1732_v0 }
 0x1fb   : > { %1586 = vmatprep.subr.mxu0 %v1732_v0 }
 0x1fd   : > { %1584 = vmatmul.mubr.msk.f32.vlgmr.msra.gmra.mrb[4].mxu0 %vm342_vm1, %v1883_v16 }
 0x1fe   : > { %1587 = vmatpush3.msra.mxu0 %v972_v57  ;;  %1588 = vmatprep.mubr.msk.f32.mxu0 %vm1733_vm0, %v1732_v0 }
 0x1ff   : > { %1601 = vmatprep.subr.mxu0 %v1732_v0 }
 0x205   : > { %1589 = vmatmul.mubr.msk.f32.vlgmr.msra.gmra.mrb[4].mxu0 %vm342_vm1, %v1894_v19 }
 0x206   : > { %1603 = vmatprep.mubr.msk.f32.mxu0 %vm1733_vm0, %v1732_v0 }
 0x2cc   : > { %v763_v58 = vpop.f32.mrb[2].mxu0 }
 0x2cd   : > { %v767_v59 = vmax.f32 %v696_v53, %v763_v58  ;;  %v1575_v60 = vpop.f32.mrb[3].mxu0 }
 0x2cf   : > { %1577 = vmatpush3.msra.mxu1 %v767_v59 }
 0x2d0   : > { %1579 = vmatmul.mubr.msk.f32.vlgmr.msra.gmra.mrb[4].mxu1 %vm342_vm1, %v768_v61  ;;  %1591 = vmatprep.subr.mxu1 %v1732_v0 }
 0x2d1   : > { %1593 = vmatprep.mubr.msk.f32.mxu1 %vm1733_vm0, %v1732_v0 }
 0x2d8   : > { %v1043_v2 = vpop.f32.mrb[4].mxu0 }
 0x2d9   : > { %v1612_v3 = vadd.f32 %v1043_v2, %v885_v1  ;;  %v1590_v4 = vpop.f32.mrb[5].mxu0 }
 0x2db   : > { %v1055_v7 = vmul.f32 %v1612_v3, %v1903_v21 }
 0x2dd   : > { %v1063_v8 = vadd.f32 %v1908_v24, %v1055_v7 }
 0x2df   : > { %v1065_v9 = vmul.f32 0.044715, %v1063_v8  ;;  %v1064_v14 = vmul.f32 0.5, %v1063_v8 }
 0x2e1   : > { %v1066_v10 = vmul.f32 %v1065_v9, %v1063_v8 }
 0x2e3   : > { %v1067_v11 = vmul.f32 %v1066_v10, %v1063_v8 }
 0x2e5   : > { %v1068_v12 = vadd.f32 %v1067_v11, %v1063_v8 }
 0x2e7   : > { %v1069_v13 = vmul.f32 0.7978846, %v1068_v12 }
 0x2e9   : > { %1662 = vtanh.f32 %v1069_v13 }
 0x2f3   : > { %v1663_v5 = vpop.eup %1662 }
 0x2f4   : > { %v1071_v6 = vadd.f32 1.0, %v1663_v5 }
 0x2f6   : > { %v1072_v15 = vmul.f32 %v1071_v6, %v1064_v14 }
 0x2f8   : > { %v1078_v17 = vmul.f32 %v1915_v35, %v1072_v15  ;;  %v1160_v18 = vmul.f32 %v1920_v37, %v1072_v15 }
 0x2fa   : > { %1592 = vmatpush3.msra.mxu1 %v1078_v17 }
 0x2fb   : > { %1594 = vmatmul.mubr.msk.f32.vlgmr.msra.gmra.mrb[6].mxu1 %vm342_vm1, %v1883_v16  ;;  %1596 = vmatprep.subr.mxu1 %v1732_v0 }
 0x2fc   : > { %1597 = vmatpush3.msra.mxu1 %v1160_v18  ;;  %1598 = vmatprep.mubr.msk.f32.mxu1 %vm1733_vm0, %v1732_v0 }
 0x2fd   : > { %1606 = vmatprep.subr.mxu1 %v1732_v0 }
 0x2ff   : > { %1599 = vmatmul.mubr.msk.f32.vlgmr.msra.gmra.mrb[8].mxu1 %vm342_vm1, %v1894_v19 }
 0x300   : > { %1608 = vmatprep.mubr.msk.f32.mxu1 %vm1733_vm0, %v1732_v0  ;;  %v1084_v0 = vmul.f32 %v1937_v40, %v1072_v15  ;;  %v1311_v40 = vld [vmem:[%s2066_s7] sm:$0xf] }
 0x3a3   : > { %v838_v20 = vpop.f32.mrb[4].mxu1 }
 0x3a4   : > { %v843_v21 = vmul.f32 0.044715, %v838_v20  ;;  %v1580_v22 = vpop.f32.mrb[5].mxu1  ;;  %v842_v26 = vmul.f32 0.5, %v838_v20 }
 0x3a6   : > { %v844_v23 = vmul.f32 %v843_v21, %v838_v20 }
 0x3a8   : > { %v845_v16 = vmul.f32 %v844_v23, %v838_v20 }
 0x3aa   : > { %v846_v24 = vadd.f32 %v845_v16, %v838_v20 }
 0x3ac   : > { %v847_v25 = vmul.f32 0.7978846, %v846_v24 }
 0x3ae   : > { %1664 = vtanh.f32 %v847_v25 }
 0x3b8   : > { %v1665_v27 = vpop.eup %1664 }
 0x3b9   : > { %v849_v28 = vadd.f32 1.0, %v1665_v27 }
 0x3bb   : > { %v850_v29 = vmul.f32 %v849_v28, %v842_v26 }
 0x3bd   : > { %852 = vst.msk [vmem:[%s1993_s12] sm:$0xf] %vm851_vm2, %v850_v29 }
 0x3ce   : > { %v1151_v30 = vpop.f32.mrb[6].mxu1 }
 0x3cf   : > { %v1152_v31 = vadd.f32 %v1151_v30, %v1084_v0  ;;  %v1595_v32 = vpop.f32.mrb[7].mxu1 }
 0x3d2   : > { %v1227_v33 = vpop.f32.mrb[8].mxu1 }
 0x3d3   : > { %v1231_v34 = vadd.f32 %v1227_v33, %v1152_v31  ;;  %v1600_v35 = vpop.f32.mrb[9].mxu1 }
 0x3d5   : > { %v1239_v36 = vadd.f32 %v1947_v50, %v1231_v34 }
 0x3d7   : > { %1602 = vmatpush3.msra.mxu0 %v1239_v36 }
 0x3d8   : > { %1604 = vmatmul.mubr.msk.f32.vlgmr.msra.gmra.mrb[6].mxu0 %vm342_vm1, %v1894_v19 }
 0x4ab   : > { %v1306_v37 = vpop.f32.mrb[6].mxu0 }
 0x4ac   : > { %v1310_v38 = vmax.f32 %v1239_v36, %v1306_v37  ;;  %v1605_v39 = vpop.f32.mrb[7].mxu0 }
 0x4ae   : > { %1607 = vmatpush3.msra.mxu1 %v1310_v38 }
 0x4af   : > { %1609 = vmatmul.mubr.msk.f32.vlgmr.msra.gmra.mrb[10].mxu1 %vm342_vm1, %v1311_v40 }
 0x582   : > { %v1381_v41 = vpop.f32.mrb[10].mxu1 }
 0x583   : > { %v1386_v42 = vmul.f32 0.044715, %v1381_v41  ;;  %v1610_v43 = vpop.f32.mrb[11].mxu1  ;;  %v1385_v48 = vmul.f32 0.5, %v1381_v41 }
 0x585   : > { %v1387_v44 = vmul.f32 %v1386_v42, %v1381_v41 }
 0x587   : > { %v1388_v45 = vmul.f32 %v1387_v44, %v1381_v41 }
 0x589   : > { %v1389_v19 = vadd.f32 %v1388_v45, %v1381_v41 }
 0x58b   : > { %v1390_v46 = vmul.f32 0.7978846, %v1389_v19 }
 0x58d   : > { %1666 = vtanh.f32 %v1390_v46 }
 0x597   : > { %v1667_v47 = vpop.eup %1666 }
 0x598   : > { %v1392_v49 = vadd.f32 1.0, %v1667_v47 }
 0x59a   : > { %v1393_v50 = vmul.f32 %v1392_v49, %v1385_v48 }
 0x59c   : > { %1519 = vst.msk [vmem:[%s1993_s12 + $0x4] sm:$0xf] %vm851_vm2, %v1393_v50 }
 0x59d   : > { %1681 = shalt.err (!%p1678_p3)
}
 0x59e   : > { %s1682_s26 = scalar_lea.hbm %s2010_s23, 128  ;;  %s1686_s19 = scalar_lea.hbm %s2067_s8, 256 }
 0x59f   : > { %p1683_p4 = scmp.ne.s32.totalorder %s2010_s23, %s1682_s26  ;;  %p1687_p9 = scmp.lt.u32.totalorder %s2010_s23, %s2067_s8 }
 0x5a0   : > { %p1688_p10 = scmp.lt.u32.totalorder %s1686_s19, %s1682_s26  ;;  %p1690_p12 = scmp.lt.u32.totalorder %s1682_s26, %s2010_s23 }
 0x5a1   : > { %p1684_p7 = pnand %p1683_p4, %p1820_p5 }
 0x5a2   : > { %p1689_p11 = por %p1688_p10, %p1687_p9 }
 0x5a3   : > { %p1685_p8 = pneg %p1684_p7 }
 0x5a4   : > { %p1691_p13 = por %p1690_p12, %p1689_p11 }
 0x5a6   : > { %p1692_p0 = pnand %p1691_p13, %p1685_p8 }
 0x5a8   : > { %1695 = shalt.err (!%p1692_p0)
}
 0x5a9   : > { %s1735_s22 = smov 64   ;;  %s1736_s9 = smov 4  }
 0x5aa   : > { %1617 = dma.vmem_to_hbm [thread:$0]  (%p1820_p5), %s2012_s20, 128, %s2010_s23, %s2018_s24, %s1735_s22, %s1735_s22, %s1736_s9  }
 0x5ab PF: > { %p1623_p1 = scmp.ge.s32.totalorder %s1730_s30, 2  ;;  %s1425_s13 = sand.u32 1, %s1718_s27  }
 0x5ac   : > { %s1426_s25 = scalar_lea.sflag [#allocation3], %s1425_s13 }
 0x5ad   : > { %p1620_p2 = pnand %p1623_p1, %p1824_p6 }
 0x5af   : > { %1713 = dma.done.wait (!%p1620_p2), %s1426_s25, 128  }
 0x5b0   : > { %1715 = vsyncadd (!%p1620_p2), %s1426_s25, 4294967168  ;;  %p18_p3 = scmp.ge.s32.totalorder %s1807_s11, 4   ;;  %s2070_s27 = smov %s1722_s28 }
 0x5b1   : > { %s2071_s28 = smov %s1726_s29  ;;  %s2072_s29 = smov %s1818_s14 }
 0x5b2   : > { %s2073_s30 = smov %s1807_s11  ;;  %20 = sbr.rel (!%p18_p3) target bundleno = 3 (0x3), region = 91 }
 0x5b9   :  { %1431 = vsyncpa [#allocation3], 1 }
 0x5ba   :  { %1433 = vsyncpa [#allocation3 + $0x1], 1 }

</bundles_post_ra>
